<compile_context>
chip_gen: v7x
topology: tpu7x:2x2x1
jax: 0.10.0
libtpu: 0.0.40
codegen_flags: <defaults>
</compile_context>

<pallas_src>
import functools

import jax
import jax.numpy as jnp
from jax.experimental import pallas as pl
from jax.experimental.pallas import tpu as pltpu


def _round_up(x, m):
    return (x + m - 1) // m * m


# ---------------------------------------------------------------------------
# Fused kernel: upsample -> conv1 -> ELU -> BN1 -> cat -> conv2 -> ELU -> BN2
# ---------------------------------------------------------------------------
def _upscale_block_kernel(
    x_ref,        # (N*Cin, L1)     flattened low-res input images
    skip_ref,     # (N, Cskip, L2)  flattened skip images
    w1_ref,       # (Cout, 9*cpad1) packed conv1 weights (tap-major, channel-padded)
    b1_ref, g1_ref, be1_ref,        # (Cout, 1)
    w2_ref,       # (Cout, 9*cpad2) packed conv2 weights
    b2_ref, g2_ref, be2_ref,        # (Cout, 1)
    out_ref,      # (N, Cout, L2)
    cat_ref,      # (N, Ccat, L2)
    xbuf,         # VMEM (cpad_max, 2*guard + N*L2) guard-banded batched image buffer
    *, N, Cin, W1, W2, H2, cpad1, cpad2, guard, eps1, eps2,
):
    Cskip = skip_ref.shape[1]
    Cout = out_ref.shape[1]
    Ccat = cat_ref.shape[1]
    L1 = x_ref.shape[1]
    L2 = out_ref.shape[2]
    NL2 = N * L2
    lw2 = W2.bit_length() - 1          # W2 / H2 / L2 are powers of two (asserted in wrapper)
    f32 = jnp.float32

    # ---- constants built once (hoisted out of all loops) -------------------
    # nearest-2x upsample expressed as a (L1, L2) 0/1 matrix (an MXU-friendly gather)
    t2 = jax.lax.broadcasted_iota(jnp.int32, (L1, L2), 1)   # output flat index
    p1 = jax.lax.broadcasted_iota(jnp.int32, (L1, L2), 0)   # source flat index
    oi = t2 >> lw2                      # output row
    oj = t2 & (W2 - 1)                  # output col
    src = (oi >> 1) * W1 + (oj >> 1)    # nearest-neighbour source index
    upsample_mat = (p1 == src).astype(f32)                  # (L1, L2)

    # per-lane edge-validity masks over the batched lane axis (images packed
    # contiguously: lane g -> image g // L2, within-image flat index g & (L2-1))
    g = jax.lax.broadcasted_iota(jnp.int32, (1, NL2), 1)
    t = g & (L2 - 1)
    jj = t & (W2 - 1)                   # within-image column
    ii = t >> lw2                       # within-image row
    m_left = (jj != 0).astype(f32)            # tap dx=-1 invalid at j == 0
    m_right = (jj != (W2 - 1)).astype(f32)    # tap dx=+1 invalid at j == W2-1
    m_top = (ii != 0).astype(f32)             # tap dy=-1 invalid at i == 0
    m_bot = (ii != (H2 - 1)).astype(f32)      # tap dy=+1 invalid at i == H2-1
    row_masks = (m_top, None, m_bot)          # indexed by dy in {0,1,2}
    col_masks = (m_left, None, m_right)       # indexed by dx in {0,1,2}

    # zero the guard-banded buffer once: guard lanes and zero-pad channel rows
    # are never written afterwards, so they stay zero for both stages.
    xbuf[...] = jnp.zeros(xbuf.shape, f32)

    def conv3x3_bias_elu(w_ref_, b_ref_, cpad):
        """3x3 'same' conv + bias + ELU of the N batched images in xbuf rows [0,cpad).

        9 tap matmuls over the full batch (K=cpad each), accumulated in vregs —
        no im2col patch buffer is materialized (review: v5e is vst-slot bound).
        """
        acc = None
        for dy in range(3):
            for dx in range(3):
                k = dy * 3 + dx
                s = (dy - 1) * W2 + (dx - 1)
                win = xbuf[0:cpad, guard + s: guard + s + NL2]      # (cpad, NL2)
                rm, cm = row_masks[dy], col_masks[dx]
                if rm is not None and cm is not None:
                    win = win * (rm * cm)
                elif rm is not None:
                    win = win * rm
                elif cm is not None:
                    win = win * cm
                mm = jax.lax.dot_general(                            # (Cout, NL2)
                    w_ref_[:, k * cpad:(k + 1) * cpad], win,
                    dimension_numbers=(((1,), (0,)), ((), ())),
                    preferred_element_type=f32)
                acc = mm if acc is None else acc + mm
        acc = acc + b_ref_[...]
        # ELU (alpha=1); clamp exp arg so the unselected branch stays finite.
        return jnp.where(acc > 0.0, acc, jnp.exp(jnp.minimum(acc, 0.0)) - 1.0)

    def batchnorm(y, g_ref_, be_ref_, eps):
        """Training-mode BN over (N,H,W) with two-pass (shifted) variance."""
        cnt = float(NL2)
        mean = jnp.sum(y, axis=1, keepdims=True) / cnt
        d = y - mean
        var = jnp.maximum(jnp.sum(d * d, axis=1, keepdims=True) / cnt, 0.0)
        scale = g_ref_[...] * jax.lax.rsqrt(var + eps)
        return d * scale + be_ref_[...]

    # --------------- stage 1: upsample -> conv1 -> ELU -> BN1 ----------------
    # one matmul upsamples the whole batch: (N*Cin, L1) @ (L1, L2) -> (N*Cin, L2)
    xup = jax.lax.dot_general(
        x_ref[...], upsample_mat,
        dimension_numbers=(((1,), (0,)), ((), ())),
        preferred_element_type=f32)
    for n in range(N):                                    # per-image slab copies only
        xbuf[0:Cin, guard + n * L2: guard + (n + 1) * L2] = xup[n * Cin:(n + 1) * Cin, :]

    y1 = conv3x3_bias_elu(w1_ref, b1_ref, cpad1)          # (Cout, NL2)
    y1n = batchnorm(y1, g1_ref, be1_ref, eps1)            # BN1 applied while live

    # write cat (already normalized — no extra BN sweep) and refill xbuf for stage 2
    for n in range(N):
        blk = y1n[:, n * L2:(n + 1) * L2]                 # (Cout, L2)
        sk = skip_ref[n]                                  # (Cskip, L2)
        cat_ref[n, 0:Cout, :] = blk
        cat_ref[n, Cout:Ccat, :] = sk                     # NOTE: partial-sublane store when Ccat%8!=0
        xbuf[0:Cout, guard + n * L2: guard + (n + 1) * L2] = blk
        xbuf[Cout:Ccat, guard + n * L2: guard + (n + 1) * L2] = sk

    # --------------- stage 2: conv2 on cat -> ELU -> BN2 ---------------------
    y2 = conv3x3_bias_elu(w2_ref, b2_ref, cpad2)          # (Cout, NL2)
    y2n = batchnorm(y2, g2_ref, be2_ref, eps2)
    for n in range(N):
        out_ref[n] = y2n[:, n * L2:(n + 1) * L2]


# ---------------------------------------------------------------------------
# Wrapper
# ---------------------------------------------------------------------------
def _pack_conv_weights(w_hwio, cpad):
    """HWIO (3,3,Cin,Cout) -> (Cout, 9*cpad), zero-padded on the input-channel axis."""
    kh, kw, cin, cout = w_hwio.shape
    wt = jnp.transpose(w_hwio, (3, 0, 1, 2)).reshape(cout, kh * kw, cin)
    wt = jnp.pad(wt, ((0, 0), (0, 0), (0, cpad - cin)))
    return wt.reshape(cout, kh * kw * cpad)


@jax.jit
def upscale_block_forward(x_nchw, skip_nchw, params):
    N, Cin, H1, W1 = x_nchw.shape
    Ns, Cskip, H2, W2 = skip_nchw.shape
    assert Ns == N and H2 == 2 * H1 and W2 == 2 * W1
    assert (W2 & (W2 - 1)) == 0 and (H2 & (H2 - 1)) == 0
    # TODO(synk): non-power-of-two spatial sizes need div/mod lane-index math in-kernel.

    Cout = params["w1"].shape[-1]
    Ccat = Cout + Cskip
    L1, L2 = H1 * W1, H2 * W2
    cpad1 = _round_up(Cin, 8)
    cpad2 = _round_up(Ccat, 8)
    cpad_max = max(cpad1, cpad2)
    guard = _round_up(W2 + 1, 128)      # zero guard lanes each side of the batched image row
    assert guard >= W2 + 1              # review: the dy=-1 taps must never under-run the buffer

    # Free (metadata-only) reshapes; no pads/repeats/transposes in the wrapper.
    x_flat = x_nchw.reshape(N * Cin, L1).astype(jnp.float32)
    skip_flat = skip_nchw.reshape(N, Cskip, L2).astype(jnp.float32)

    w1_r = _pack_conv_weights(params["w1"].astype(jnp.float32), cpad1)
    w2_r = _pack_conv_weights(params["w2"].astype(jnp.float32), cpad2)
    b1 = params["b1"].reshape(Cout, 1).astype(jnp.float32)
    g1 = params["gamma1"].reshape(Cout, 1).astype(jnp.float32)
    be1 = params["beta1"].reshape(Cout, 1).astype(jnp.float32)
    b2 = params["b2"].reshape(Cout, 1).astype(jnp.float32)
    g2 = params["gamma2"].reshape(Cout, 1).astype(jnp.float32)
    be2 = params["beta2"].reshape(Cout, 1).astype(jnp.float32)

    kernel = functools.partial(
        _upscale_block_kernel,
        N=N, Cin=Cin, W1=W1, W2=W2, H2=H2,
        cpad1=cpad1, cpad2=cpad2, guard=guard,
        eps1=1e-5,    # bn1: default eps
        eps2=0.005)   # bn2: positional arg of BatchNorm2d is eps!

    # Explicit VMEM budget + cost estimate (review item).
    NL2 = N * L2
    xbuf_bytes = cpad_max * (2 * guard + NL2) * 4
    io_bytes = 4 * (N * Cin * L1 + N * Cskip * L2
                    + Cout * 9 * (cpad1 + cpad2) + 6 * Cout
                    + N * Cout * L2 + N * Ccat * L2)
    up_bytes = L1 * L2 * 4
    vmem_limit = min(64 << 20, max(4 << 20, 2 * (xbuf_bytes + io_bytes + up_bytes) + (2 << 20)))
    cost = pl.CostEstimate(
        flops=(2 * N * Cin * L1 * L2
               + 2 * Cout * 9 * cpad1 * NL2
               + 2 * Cout * 9 * cpad2 * NL2),
        transcendentals=2 * N * Cout * L2,
        bytes_accessed=io_bytes)

    vec_spec = pl.BlockSpec((Cout, 1), lambda i: (0, 0))
    out_flat, cat_flat = pl.pallas_call(
        kernel,
        out_shape=(
            jax.ShapeDtypeStruct((N, Cout, L2), jnp.float32),
            jax.ShapeDtypeStruct((N, Ccat, L2), jnp.float32),
        ),
        grid=(1,),
        in_specs=[
            pl.BlockSpec((N * Cin, L1), lambda i: (0, 0)),
            pl.BlockSpec((N, Cskip, L2), lambda i: (0, 0, 0)),
            pl.BlockSpec((Cout, 9 * cpad1), lambda i: (0, 0)),
            vec_spec, vec_spec, vec_spec,
            pl.BlockSpec((Cout, 9 * cpad2), lambda i: (0, 0)),
            vec_spec, vec_spec, vec_spec,
        ],
        out_specs=(
            pl.BlockSpec((N, Cout, L2), lambda i: (0, 0, 0)),
            pl.BlockSpec((N, Ccat, L2), lambda i: (0, 0, 0)),
        ),
        scratch_shapes=[
            pltpu.VMEM((cpad_max, 2 * guard + NL2), jnp.float32),
        ],
        compiler_params=pltpu.CompilerParams(
            dimension_semantics=("arbitrary",),
            vmem_limit_bytes=int(vmem_limit)),
        cost_estimate=cost,
    )(x_flat, skip_flat, w1_r, b1, g1, be1, w2_r, b2, g2, be2)

    # Outputs are channel-major per image -> free reshape back to NCHW.
    return (out_flat.reshape(N, Cout, H2, W2),
            cat_flat.reshape(N, Ccat, H2, W2))


# ---------------------------------------------------------------------------
# Pure-JAX reference (for correctness check)
# ---------------------------------------------------------------------------
def _conv3x3_ref(x, w, b):
    return jax.lax.conv_general_dilated(
        x, w, window_strides=(1, 1), padding=((1, 1), (1, 1)),
        dimension_numbers=("NHWC", "HWIO", "NHWC")) + b


def _elu_ref(x):
    return jnp.where(x > 0.0, x, jnp.expm1(jnp.minimum(x, 0.0)))


def _bn_ref(y, gamma, beta, eps):
    mean = jnp.mean(y, axis=(0, 1, 2))
    var = jnp.var(y, axis=(0, 1, 2))
    return (y - mean) * jax.lax.rsqrt(var + eps) * gamma + beta


def upscale_block_ref(x_nchw, skip_nchw, params):
    x = jnp.transpose(x_nchw, (0, 2, 3, 1)).astype(jnp.float32)
    skip = jnp.transpose(skip_nchw, (0, 2, 3, 1)).astype(jnp.float32)
    x_up = jnp.repeat(jnp.repeat(x, 2, axis=1), 2, axis=2)
    y1 = _bn_ref(_elu_ref(_conv3x3_ref(x_up, params["w1"], params["b1"])),
                 params["gamma1"], params["beta1"], eps=1e-5)
    cat = jnp.concatenate([y1, skip], axis=-1)
    y2 = _bn_ref(_elu_ref(_conv3x3_ref(cat, params["w2"], params["b2"])),
                 params["gamma2"], params["beta2"], eps=0.005)
    return jnp.transpose(y2, (0, 3, 1, 2)), jnp.transpose(cat, (0, 3, 1, 2))


# ---------------------------------------------------------------------------
if __name__ == "__main__":
    # in_channels=8, skip_channels=4, out_channels=8; input 8x8 -> upsampled 16x16.
    N, Cin, Cskip, Cout = 2, 8, 4, 8
    Hs, Ws = 8, 8

    key = jax.random.PRNGKey(0)
    keys = jax.random.split(key, 10)

    params = {
        "w1": 0.1 * jax.random.normal(keys[0], (3, 3, Cin, Cout), jnp.float32),
        "b1": 0.05 * jax.random.normal(keys[1], (Cout,), jnp.float32),
        "gamma1": 1.0 + 0.1 * jax.random.normal(keys[2], (Cout,), jnp.float32),
        "beta1": 0.1 * jax.random.normal(keys[3], (Cout,), jnp.float32),
        "w2": 0.1 * jax.random.normal(keys[4], (3, 3, Cout + Cskip, Cout), jnp.float32),
        "b2": 0.05 * jax.random.normal(keys[5], (Cout,), jnp.float32),
        "gamma2": 1.0 + 0.1 * jax.random.normal(keys[6], (Cout,), jnp.float32),
        "beta2": 0.1 * jax.random.normal(keys[7], (Cout,), jnp.float32),
    }

    x = jax.random.normal(keys[8], (N, Cin, Hs, Ws), jnp.float32)
    skip = jax.random.normal(keys[9], (N, Cskip, 2 * Hs, 2 * Ws), jnp.float32)

    out, cat = upscale_block_forward(x, skip, params)
    out = jax.block_until_ready(out)
    cat = jax.block_until_ready(cat)

    out_ref, cat_ref = upscale_block_ref(x, skip, params)
    assert out.shape == (N, Cout, 2 * Hs, 2 * Ws)
    assert cat.shape == (N, Cout + Cskip, 2 * Hs, 2 * Ws)
    assert jnp.max(jnp.abs(out - out_ref)) < 5e-2
    assert jnp.max(jnp.abs(cat - cat_ref)) < 5e-2

    print("KERNEL_OK")
</pallas_src>

<mosaic_0001>
module attributes {stable_mosaic.version = 11 : i64} {
  func.func @_upscale_block_kernel(%arg0: i32, %arg1: memref<16x64xf32, #tpu.memory_space<vmem>>, %arg2: memref<2x4x256xf32, #tpu.memory_space<vmem>>, %arg3: memref<8x72xf32, #tpu.memory_space<vmem>>, %arg4: memref<8x1xf32, #tpu.memory_space<vmem>>, %arg5: memref<8x1xf32, #tpu.memory_space<vmem>>, %arg6: memref<8x1xf32, #tpu.memory_space<vmem>>, %arg7: memref<8x144xf32, #tpu.memory_space<vmem>>, %arg8: memref<8x1xf32, #tpu.memory_space<vmem>>, %arg9: memref<8x1xf32, #tpu.memory_space<vmem>>, %arg10: memref<8x1xf32, #tpu.memory_space<vmem>>, %arg11: memref<2x8x256xf32, #tpu.memory_space<vmem>>, %arg12: memref<2x12x256xf32, #tpu.memory_space<vmem>>, %arg13: memref<16x768xf32, #tpu.memory_space<vmem>>) attributes {dimension_semantics = [#tpu.dimension_semantics<arbitrary>], iteration_bounds = array<i64: 1>, scalar_prefetch = 0 : i64, scratch_operands = 1 : i64, tpu.core_type = #tpu.core_type<tc>, window_params = [{pipeline_mode = #tpu.pipeline_mode<synchronous>, transform_indices = @transform_0, window_bounds = array<i64: 16, 64>}, {pipeline_mode = #tpu.pipeline_mode<synchronous>, transform_indices = @transform_1, window_bounds = array<i64: 2, 4, 256>}, {pipeline_mode = #tpu.pipeline_mode<synchronous>, transform_indices = @transform_2, window_bounds = array<i64: 8, 72>}, {pipeline_mode = #tpu.pipeline_mode<synchronous>, transform_indices = @transform_3, window_bounds = array<i64: 8, 1>}, {pipeline_mode = #tpu.pipeline_mode<synchronous>, transform_indices = @transform_4, window_bounds = array<i64: 8, 1>}, {pipeline_mode = #tpu.pipeline_mode<synchronous>, transform_indices = @transform_5, window_bounds = array<i64: 8, 1>}, {pipeline_mode = #tpu.pipeline_mode<synchronous>, transform_indices = @transform_6, window_bounds = array<i64: 8, 144>}, {pipeline_mode = #tpu.pipeline_mode<synchronous>, transform_indices = @transform_7, window_bounds = array<i64: 8, 1>}, {pipeline_mode = #tpu.pipeline_mode<synchronous>, transform_indices = @transform_8, window_bounds = array<i64: 8, 1>}, {pipeline_mode = #tpu.pipeline_mode<synchronous>, transform_indices = @transform_9, window_bounds = array<i64: 8, 1>}, {pipeline_mode = #tpu.pipeline_mode<synchronous>, transform_indices = @transform_10, window_bounds = array<i64: 2, 8, 256>}, {pipeline_mode = #tpu.pipeline_mode<synchronous>, transform_indices = @transform_11, window_bounds = array<i64: 2, 12, 256>}]} {
    %0 = tpu.iota {dimensions = array<i32: 1>} : vector<64x256xi32>
    %1 = tpu.iota {dimensions = array<i32: 0>} : vector<64x256xi32>
    %c4_i32 = arith.constant 4 : i32
    %2 = vector.broadcast %c4_i32 : i32 to vector<64x256xi32>
    %3 = arith.shrsi %0, %2 : vector<64x256xi32>
    %c15_i32 = arith.constant 15 : i32
    %4 = vector.broadcast %c15_i32 : i32 to vector<64x256xi32>
    %5 = arith.andi %0, %4 : vector<64x256xi32>
    %c1_i32 = arith.constant 1 : i32
    %6 = vector.broadcast %c1_i32 : i32 to vector<64x256xi32>
    %7 = arith.shrsi %3, %6 : vector<64x256xi32>
    %c8_i32 = arith.constant 8 : i32
    %8 = vector.broadcast %c8_i32 : i32 to vector<64x256xi32>
    %9 = arith.muli %7, %8 : vector<64x256xi32>
    %c1_i32_0 = arith.constant 1 : i32
    %10 = vector.broadcast %c1_i32_0 : i32 to vector<64x256xi32>
    %11 = arith.shrsi %5, %10 : vector<64x256xi32>
    %12 = arith.addi %9, %11 : vector<64x256xi32>
    %13 = arith.cmpi eq, %1, %12 : vector<64x256xi32>
    %14 = arith.extui %13 : vector<64x256xi1> to vector<64x256xi32>
    %15 = arith.sitofp %14 : vector<64x256xi32> to vector<64x256xf32>
    %16 = tpu.iota {dimensions = array<i32: 1>} : vector<1x512xi32>
    %c255_i32 = arith.constant 255 : i32
    %17 = vector.broadcast %c255_i32 : i32 to vector<1x512xi32>
    %18 = arith.andi %16, %17 : vector<1x512xi32>
    %c15_i32_1 = arith.constant 15 : i32
    %19 = vector.broadcast %c15_i32_1 : i32 to vector<1x512xi32>
    %20 = arith.andi %18, %19 : vector<1x512xi32>
    %c4_i32_2 = arith.constant 4 : i32
    %21 = vector.broadcast %c4_i32_2 : i32 to vector<1x512xi32>
    %22 = arith.shrsi %18, %21 : vector<1x512xi32>
    %c0_i32 = arith.constant 0 : i32
    %23 = vector.broadcast %c0_i32 : i32 to vector<1x512xi32>
    %24 = arith.cmpi ne, %20, %23 : vector<1x512xi32>
    %25 = arith.extui %24 : vector<1x512xi1> to vector<1x512xi32>
    %26 = arith.sitofp %25 : vector<1x512xi32> to vector<1x512xf32>
    %c15_i32_3 = arith.constant 15 : i32
    %27 = vector.broadcast %c15_i32_3 : i32 to vector<1x512xi32>
    %28 = arith.cmpi ne, %20, %27 : vector<1x512xi32>
    %29 = arith.extui %28 : vector<1x512xi1> to vector<1x512xi32>
    %30 = arith.sitofp %29 : vector<1x512xi32> to vector<1x512xf32>
    %c0_i32_4 = arith.constant 0 : i32
    %31 = vector.broadcast %c0_i32_4 : i32 to vector<1x512xi32>
    %32 = arith.cmpi ne, %22, %31 : vector<1x512xi32>
    %33 = arith.extui %32 : vector<1x512xi1> to vector<1x512xi32>
    %34 = arith.sitofp %33 : vector<1x512xi32> to vector<1x512xf32>
    %c15_i32_5 = arith.constant 15 : i32
    %35 = vector.broadcast %c15_i32_5 : i32 to vector<1x512xi32>
    %36 = arith.cmpi ne, %22, %35 : vector<1x512xi32>
    %37 = arith.extui %36 : vector<1x512xi1> to vector<1x512xi32>
    %38 = arith.sitofp %37 : vector<1x512xi32> to vector<1x512xf32>
    %cst = arith.constant 0.000000e+00 : f32
    %39 = vector.broadcast %cst : f32 to vector<16x768xf32>
    %c0 = arith.constant 0 : index
    %c0_6 = arith.constant 0 : index
    %40 = vector.load %arg13[%c0, %c0_6] : memref<16x768xf32, #tpu.memory_space<vmem>>, vector<16x768xf32>
    tpu.vector_store %arg13[%c0, %c0_6], %39 {strides = array<i32>} : memref<16x768xf32, #tpu.memory_space<vmem>>, vector<16x768xf32>,
    %c0_7 = arith.constant 0 : index
    %c0_8 = arith.constant 0 : index
    %41 = vector.load %arg1[%c0_7, %c0_8] : memref<16x64xf32, #tpu.memory_space<vmem>>, vector<16x64xf32>
    %cst_9 = arith.constant dense<0.000000e+00> : vector<16x256xf32>
    %42 = tpu.matmul %41, %15, %cst_9 {dimension_numbers = #tpu.dot_dimension_numbers<[1], [0], [0], [1], [0, 0, 1, 1], [], []>} : vector<16x64xf32>, vector<64x256xf32>, vector<16x256xf32> -> vector<16x256xf32>
    %43 = vector.extract_strided_slice %42 {offsets = [0, 0], sizes = [8, 256], strides = [1, 1]} : vector<16x256xf32> to vector<8x256xf32>
    %c0_10 = arith.constant 0 : index
    %c128 = arith.constant 128 : index
    %44 = vector.load %arg13[%c0_10, %c128] : memref<16x768xf32, #tpu.memory_space<vmem>>, vector<8x256xf32>
    tpu.vector_store %arg13[%c0_10, %c128], %43 {strides = array<i32>} : memref<16x768xf32, #tpu.memory_space<vmem>>, vector<8x256xf32>,
    %45 = vector.extract_strided_slice %42 {offsets = [8, 0], sizes = [8, 256], strides = [1, 1]} : vector<16x256xf32> to vector<8x256xf32>
    %c0_11 = arith.constant 0 : index
    %c384 = arith.constant 384 : index
    %46 = vector.load %arg13[%c0_11, %c384] : memref<16x768xf32, #tpu.memory_space<vmem>>, vector<8x256xf32>
    tpu.vector_store %arg13[%c0_11, %c384], %45 {strides = array<i32>} : memref<16x768xf32, #tpu.memory_space<vmem>>, vector<8x256xf32>,
    %c0_12 = arith.constant 0 : index
    %c111 = arith.constant 111 : index
    %47 = vector.load %arg13[%c0_12, %c111] : memref<16x768xf32, #tpu.memory_space<vmem>>, vector<8x512xf32>
    %48 = arith.mulf %34, %26 : vector<1x512xf32>
    %49 = vector.broadcast %48 : vector<1x512xf32> to vector<8x512xf32>
    %50 = arith.mulf %47, %49 : vector<8x512xf32>
    %c0_13 = arith.constant 0 : index
    %c0_14 = arith.constant 0 : index
    %51 = vector.load %arg3[%c0_13, %c0_14] : memref<8x72xf32, #tpu.memory_space<vmem>>, vector<8x8xf32>
    %cst_15 = arith.constant dense<0.000000e+00> : vector<8x512xf32>
    %52 = tpu.matmul %51, %50, %cst_15 {dimension_numbers = #tpu.dot_dimension_numbers<[1], [0], [0], [1], [0, 0, 1, 1], [], []>} : vector<8x8xf32>, vector<8x512xf32>, vector<8x512xf32> -> vector<8x512xf32>
    %c0_16 = arith.constant 0 : index
    %c112 = arith.constant 112 : index
    %53 = vector.load %arg13[%c0_16, %c112] : memref<16x768xf32, #tpu.memory_space<vmem>>, vector<8x512xf32>
    %54 = vector.broadcast %34 : vector<1x512xf32> to vector<8x512xf32>
    %55 = arith.mulf %53, %54 : vector<8x512xf32>
    %c0_17 = arith.constant 0 : index
    %c8 = arith.constant 8 : index
    %56 = vector.load %arg3[%c0_17, %c8] : memref<8x72xf32, #tpu.memory_space<vmem>>, vector<8x8xf32>
    %cst_18 = arith.constant dense<0.000000e+00> : vector<8x512xf32>
    %57 = tpu.matmul %56, %55, %cst_18 {dimension_numbers = #tpu.dot_dimension_numbers<[1], [0], [0], [1], [0, 0, 1, 1], [], []>} : vector<8x8xf32>, vector<8x512xf32>, vector<8x512xf32> -> vector<8x512xf32>
    %58 = arith.addf %52, %57 : vector<8x512xf32>
    %c0_19 = arith.constant 0 : index
    %c113 = arith.constant 113 : index
    %59 = vector.load %arg13[%c0_19, %c113] : memref<16x768xf32, #tpu.memory_space<vmem>>, vector<8x512xf32>
    %60 = arith.mulf %34, %30 : vector<1x512xf32>
    %61 = vector.broadcast %60 : vector<1x512xf32> to vector<8x512xf32>
    %62 = arith.mulf %59, %61 : vector<8x512xf32>
    %c0_20 = arith.constant 0 : index
    %c16 = arith.constant 16 : index
    %63 = vector.load %arg3[%c0_20, %c16] : memref<8x72xf32, #tpu.memory_space<vmem>>, vector<8x8xf32>
    %cst_21 = arith.constant dense<0.000000e+00> : vector<8x512xf32>
    %64 = tpu.matmul %63, %62, %cst_21 {dimension_numbers = #tpu.dot_dimension_numbers<[1], [0], [0], [1], [0, 0, 1, 1], [], []>} : vector<8x8xf32>, vector<8x512xf32>, vector<8x512xf32> -> vector<8x512xf32>
    %65 = arith.addf %58, %64 : vector<8x512xf32>
    %c0_22 = arith.constant 0 : index
    %c127 = arith.constant 127 : index
    %66 = vector.load %arg13[%c0_22, %c127] : memref<16x768xf32, #tpu.memory_space<vmem>>, vector<8x512xf32>
    %67 = vector.broadcast %26 : vector<1x512xf32> to vector<8x512xf32>
    %68 = arith.mulf %66, %67 : vector<8x512xf32>
    %c0_23 = arith.constant 0 : index
    %c24 = arith.constant 24 : index
    %69 = vector.load %arg3[%c0_23, %c24] : memref<8x72xf32, #tpu.memory_space<vmem>>, vector<8x8xf32>
    %cst_24 = arith.constant dense<0.000000e+00> : vector<8x512xf32>
    %70 = tpu.matmul %69, %68, %cst_24 {dimension_numbers = #tpu.dot_dimension_numbers<[1], [0], [0], [1], [0, 0, 1, 1], [], []>} : vector<8x8xf32>, vector<8x512xf32>, vector<8x512xf32> -> vector<8x512xf32>
    %71 = arith.addf %65, %70 : vector<8x512xf32>
    %c0_25 = arith.constant 0 : index
    %c128_26 = arith.constant 128 : index
    %72 = vector.load %arg13[%c0_25, %c128_26] : memref<16x768xf32, #tpu.memory_space<vmem>>, vector<8x512xf32>
    %c0_27 = arith.constant 0 : index
    %c32 = arith.constant 32 : index
    %73 = vector.load %arg3[%c0_27, %c32] : memref<8x72xf32, #tpu.memory_space<vmem>>, vector<8x8xf32>
    %cst_28 = arith.constant dense<0.000000e+00> : vector<8x512xf32>
    %74 = tpu.matmul %73, %72, %cst_28 {dimension_numbers = #tpu.dot_dimension_numbers<[1], [0], [0], [1], [0, 0, 1, 1], [], []>} : vector<8x8xf32>, vector<8x512xf32>, vector<8x512xf32> -> vector<8x512xf32>
    %75 = arith.addf %71, %74 : vector<8x512xf32>
    %c0_29 = arith.constant 0 : index
    %c129 = arith.constant 129 : index
    %76 = vector.load %arg13[%c0_29, %c129] : memref<16x768xf32, #tpu.memory_space<vmem>>, vector<8x512xf32>
    %77 = vector.broadcast %30 : vector<1x512xf32> to vector<8x512xf32>
    %78 = arith.mulf %76, %77 : vector<8x512xf32>
    %c0_30 = arith.constant 0 : index
    %c40 = arith.constant 40 : index
    %79 = vector.load %arg3[%c0_30, %c40] : memref<8x72xf32, #tpu.memory_space<vmem>>, vector<8x8xf32>
    %cst_31 = arith.constant dense<0.000000e+00> : vector<8x512xf32>
    %80 = tpu.matmul %79, %78, %cst_31 {dimension_numbers = #tpu.dot_dimension_numbers<[1], [0], [0], [1], [0, 0, 1, 1], [], []>} : vector<8x8xf32>, vector<8x512xf32>, vector<8x512xf32> -> vector<8x512xf32>
    %81 = arith.addf %75, %80 : vector<8x512xf32>
    %c0_32 = arith.constant 0 : index
    %c143 = arith.constant 143 : index
    %82 = vector.load %arg13[%c0_32, %c143] : memref<16x768xf32, #tpu.memory_space<vmem>>, vector<8x512xf32>
    %83 = arith.mulf %38, %26 : vector<1x512xf32>
    %84 = vector.broadcast %83 : vector<1x512xf32> to vector<8x512xf32>
    %85 = arith.mulf %82, %84 : vector<8x512xf32>
    %c0_33 = arith.constant 0 : index
    %c48 = arith.constant 48 : index
    %86 = vector.load %arg3[%c0_33, %c48] : memref<8x72xf32, #tpu.memory_space<vmem>>, vector<8x8xf32>
    %cst_34 = arith.constant dense<0.000000e+00> : vector<8x512xf32>
    %87 = tpu.matmul %86, %85, %cst_34 {dimension_numbers = #tpu.dot_dimension_numbers<[1], [0], [0], [1], [0, 0, 1, 1], [], []>} : vector<8x8xf32>, vector<8x512xf32>, vector<8x512xf32> -> vector<8x512xf32>
    %88 = arith.addf %81, %87 : vector<8x512xf32>
    %c0_35 = arith.constant 0 : index
    %c144 = arith.constant 144 : index
    %89 = vector.load %arg13[%c0_35, %c144] : memref<16x768xf32, #tpu.memory_space<vmem>>, vector<8x512xf32>
    %90 = vector.broadcast %38 : vector<1x512xf32> to vector<8x512xf32>
    %91 = arith.mulf %89, %90 : vector<8x512xf32>
    %c0_36 = arith.constant 0 : index
    %c56 = arith.constant 56 : index
    %92 = vector.load %arg3[%c0_36, %c56] : memref<8x72xf32, #tpu.memory_space<vmem>>, vector<8x8xf32>
    %cst_37 = arith.constant dense<0.000000e+00> : vector<8x512xf32>
    %93 = tpu.matmul %92, %91, %cst_37 {dimension_numbers = #tpu.dot_dimension_numbers<[1], [0], [0], [1], [0, 0, 1, 1], [], []>} : vector<8x8xf32>, vector<8x512xf32>, vector<8x512xf32> -> vector<8x512xf32>
    %94 = arith.addf %88, %93 : vector<8x512xf32>
    %c0_38 = arith.constant 0 : index
    %c145 = arith.constant 145 : index
    %95 = vector.load %arg13[%c0_38, %c145] : memref<16x768xf32, #tpu.memory_space<vmem>>, vector<8x512xf32>
    %96 = arith.mulf %38, %30 : vector<1x512xf32>
    %97 = vector.broadcast %96 : vector<1x512xf32> to vector<8x512xf32>
    %98 = arith.mulf %95, %97 : vector<8x512xf32>
    %c0_39 = arith.constant 0 : index
    %c64 = arith.constant 64 : index
    %99 = vector.load %arg3[%c0_39, %c64] : memref<8x72xf32, #tpu.memory_space<vmem>>, vector<8x8xf32>
    %cst_40 = arith.constant dense<0.000000e+00> : vector<8x512xf32>
    %100 = tpu.matmul %99, %98, %cst_40 {dimension_numbers = #tpu.dot_dimension_numbers<[1], [0], [0], [1], [0, 0, 1, 1], [], []>} : vector<8x8xf32>, vector<8x512xf32>, vector<8x512xf32> -> vector<8x512xf32>
    %101 = arith.addf %94, %100 : vector<8x512xf32>
    %c0_41 = arith.constant 0 : index
    %c0_42 = arith.constant 0 : index
    %102 = vector.load %arg4[%c0_41, %c0_42] : memref<8x1xf32, #tpu.memory_space<vmem>>, vector<8x1xf32>
    %103 = vector.broadcast %102 : vector<8x1xf32> to vector<8x512xf32>
    %104 = arith.addf %101, %103 : vector<8x512xf32>
    %cst_43 = arith.constant 0.000000e+00 : f32
    %105 = vector.broadcast %cst_43 : f32 to vector<8x512xf32>
    %106 = arith.cmpf ogt, %104, %105 : vector<8x512xf32>
    %cst_44 = arith.constant 0.000000e+00 : f32
    %107 = vector.broadcast %cst_44 : f32 to vector<8x512xf32>
    %108 = arith.minimumf %104, %107 : vector<8x512xf32>
    %109 = math.exp %108 : vector<8x512xf32>
    %cst_45 = arith.constant 1.000000e+00 : f32
    %110 = vector.broadcast %cst_45 : f32 to vector<8x512xf32>
    %111 = arith.subf %109, %110 : vector<8x512xf32>
    %112 = arith.select %106, %104, %111 : vector<8x512xi1>, vector<8x512xf32>
    %cst_46 = arith.constant dense<0.000000e+00> : vector<8xf32>
    %113 = vector.multi_reduction <add>, %112, %cst_46 [1] : vector<8x512xf32> to vector<8xf32>
    %114 = vector.shape_cast %113 : vector<8xf32> to vector<8x1xf32>
    %cst_47 = arith.constant 5.120000e+02 : f32
    %115 = vector.broadcast %cst_47 : f32 to vector<8x1xf32>
    %116 = arith.divf %114, %115 : vector<8x1xf32>
    %117 = vector.broadcast %116 : vector<8x1xf32> to vector<8x512xf32>
    %118 = arith.subf %112, %117 : vector<8x512xf32>
    %119 = arith.mulf %118, %118 : vector<8x512xf32>
    %cst_48 = arith.constant dense<0.000000e+00> : vector<8xf32>
    %120 = vector.multi_reduction <add>, %119, %cst_48 [1] : vector<8x512xf32> to vector<8xf32>
    %121 = vector.shape_cast %120 : vector<8xf32> to vector<8x1xf32>
    %cst_49 = arith.constant 5.120000e+02 : f32
    %122 = vector.broadcast %cst_49 : f32 to vector<8x1xf32>
    %123 = arith.divf %121, %122 : vector<8x1xf32>
    %cst_50 = arith.constant 0.000000e+00 : f32
    %124 = vector.broadcast %cst_50 : f32 to vector<8x1xf32>
    %125 = arith.maximumf %123, %124 : vector<8x1xf32>
    %c0_51 = arith.constant 0 : index
    %c0_52 = arith.constant 0 : index
    %126 = vector.load %arg5[%c0_51, %c0_52] : memref<8x1xf32, #tpu.memory_space<vmem>>, vector<8x1xf32>
    %cst_53 = arith.constant 9.99999974E-6 : f32
    %127 = vector.broadcast %cst_53 : f32 to vector<8x1xf32>
    %128 = arith.addf %125, %127 : vector<8x1xf32>
    %129 = math.rsqrt %128 : vector<8x1xf32>
    %130 = arith.mulf %126, %129 : vector<8x1xf32>
    %131 = vector.broadcast %130 : vector<8x1xf32> to vector<8x512xf32>
    %132 = arith.mulf %118, %131 : vector<8x512xf32>
    %c0_54 = arith.constant 0 : index
    %c0_55 = arith.constant 0 : index
    %133 = vector.load %arg6[%c0_54, %c0_55] : memref<8x1xf32, #tpu.memory_space<vmem>>, vector<8x1xf32>
    %134 = vector.broadcast %133 : vector<8x1xf32> to vector<8x512xf32>
    %135 = arith.addf %132, %134 : vector<8x512xf32>
    %136 = vector.extract_strided_slice %135 {offsets = [0, 0], sizes = [8, 256], strides = [1, 1]} : vector<8x512xf32> to vector<8x256xf32>
    %c0_56 = arith.constant 0 : index
    %c0_57 = arith.constant 0 : index
    %c0_58 = arith.constant 0 : index
    %137 = vector.load %arg2[%c0_56, %c0_57, %c0_58] : memref<2x4x256xf32, #tpu.memory_space<vmem>>, vector<1x4x256xf32>
    %138 = vector.shape_cast %137 : vector<1x4x256xf32> to vector<4x256xf32>
    %c0_59 = arith.constant 0 : index
    %c0_60 = arith.constant 0 : index
    %c0_61 = arith.constant 0 : index
    %139 = vector.load %arg12[%c0_59, %c0_60, %c0_61] : memref<2x12x256xf32, #tpu.memory_space<vmem>>, vector<1x8x256xf32>
    %140 = vector.shape_cast %139 : vector<1x8x256xf32> to vector<8x256xf32>
    %141 = vector.shape_cast %136 : vector<8x256xf32> to vector<1x8x256xf32>
    tpu.vector_store %arg12[%c0_59, %c0_60, %c0_61], %141 {strides = array<i32>} : memref<2x12x256xf32, #tpu.memory_space<vmem>>, vector<1x8x256xf32>,
    %c0_62 = arith.constant 0 : index
    %c8_63 = arith.constant 8 : index
    %c0_64 = arith.constant 0 : index
    %142 = vector.load %arg12[%c0_62, %c8_63, %c0_64] : memref<2x12x256xf32, #tpu.memory_space<vmem>>, vector<1x4x256xf32>
    %143 = vector.shape_cast %142 : vector<1x4x256xf32> to vector<4x256xf32>
    %144 = vector.shape_cast %138 : vector<4x256xf32> to vector<1x4x256xf32>
    tpu.vector_store %arg12[%c0_62, %c8_63, %c0_64], %144 {strides = array<i32>} : memref<2x12x256xf32, #tpu.memory_space<vmem>>, vector<1x4x256xf32>,
    %c0_65 = arith.constant 0 : index
    %c128_66 = arith.constant 128 : index
    %145 = vector.load %arg13[%c0_65, %c128_66] : memref<16x768xf32, #tpu.memory_space<vmem>>, vector<8x256xf32>
    tpu.vector_store %arg13[%c0_65, %c128_66], %136 {strides = array<i32>} : memref<16x768xf32, #tpu.memory_space<vmem>>, vector<8x256xf32>,
    %c8_67 = arith.constant 8 : index
    %c128_68 = arith.constant 128 : index
    %146 = vector.load %arg13[%c8_67, %c128_68] : memref<16x768xf32, #tpu.memory_space<vmem>>, vector<4x256xf32>
    tpu.vector_store %arg13[%c8_67, %c128_68], %138 {strides = array<i32>} : memref<16x768xf32, #tpu.memory_space<vmem>>, vector<4x256xf32>,
    %147 = vector.extract_strided_slice %135 {offsets = [0, 256], sizes = [8, 256], strides = [1, 1]} : vector<8x512xf32> to vector<8x256xf32>
    %c1 = arith.constant 1 : index
    %c0_69 = arith.constant 0 : index
    %c0_70 = arith.constant 0 : index
    %148 = vector.load %arg2[%c1, %c0_69, %c0_70] : memref<2x4x256xf32, #tpu.memory_space<vmem>>, vector<1x4x256xf32>
    %149 = vector.shape_cast %148 : vector<1x4x256xf32> to vector<4x256xf32>
    %c1_71 = arith.constant 1 : index
    %c0_72 = arith.constant 0 : index
    %c0_73 = arith.constant 0 : index
    %150 = vector.load %arg12[%c1_71, %c0_72, %c0_73] : memref<2x12x256xf32, #tpu.memory_space<vmem>>, vector<1x8x256xf32>
    %151 = vector.shape_cast %150 : vector<1x8x256xf32> to vector<8x256xf32>
    %152 = vector.shape_cast %147 : vector<8x256xf32> to vector<1x8x256xf32>
    tpu.vector_store %arg12[%c1_71, %c0_72, %c0_73], %152 {strides = array<i32>} : memref<2x12x256xf32, #tpu.memory_space<vmem>>, vector<1x8x256xf32>,
    %c1_74 = arith.constant 1 : index
    %c8_75 = arith.constant 8 : index
    %c0_76 = arith.constant 0 : index
    %153 = vector.load %arg12[%c1_74, %c8_75, %c0_76] : memref<2x12x256xf32, #tpu.memory_space<vmem>>, vector<1x4x256xf32>
    %154 = vector.shape_cast %153 : vector<1x4x256xf32> to vector<4x256xf32>
    %155 = vector.shape_cast %149 : vector<4x256xf32> to vector<1x4x256xf32>
    tpu.vector_store %arg12[%c1_74, %c8_75, %c0_76], %155 {strides = array<i32>} : memref<2x12x256xf32, #tpu.memory_space<vmem>>, vector<1x4x256xf32>,
    %c0_77 = arith.constant 0 : index
    %c384_78 = arith.constant 384 : index
    %156 = vector.load %arg13[%c0_77, %c384_78] : memref<16x768xf32, #tpu.memory_space<vmem>>, vector<8x256xf32>
    tpu.vector_store %arg13[%c0_77, %c384_78], %147 {strides = array<i32>} : memref<16x768xf32, #tpu.memory_space<vmem>>, vector<8x256xf32>,
    %c8_79 = arith.constant 8 : index
    %c384_80 = arith.constant 384 : index
    %157 = vector.load %arg13[%c8_79, %c384_80] : memref<16x768xf32, #tpu.memory_space<vmem>>, vector<4x256xf32>
    tpu.vector_store %arg13[%c8_79, %c384_80], %149 {strides = array<i32>} : memref<16x768xf32, #tpu.memory_space<vmem>>, vector<4x256xf32>,
    %c0_81 = arith.constant 0 : index
    %c111_82 = arith.constant 111 : index
    %158 = vector.load %arg13[%c0_81, %c111_82] : memref<16x768xf32, #tpu.memory_space<vmem>>, vector<16x512xf32>
    %159 = arith.mulf %34, %26 : vector<1x512xf32>
    %160 = vector.broadcast %159 : vector<1x512xf32> to vector<16x512xf32>
    %161 = arith.mulf %158, %160 : vector<16x512xf32>
    %c0_83 = arith.constant 0 : index
    %c0_84 = arith.constant 0 : index
    %162 = vector.load %arg7[%c0_83, %c0_84] : memref<8x144xf32, #tpu.memory_space<vmem>>, vector<8x16xf32>
    %cst_85 = arith.constant dense<0.000000e+00> : vector<8x512xf32>
    %163 = tpu.matmul %162, %161, %cst_85 {dimension_numbers = #tpu.dot_dimension_numbers<[1], [0], [0], [1], [0, 0, 1, 1], [], []>} : vector<8x16xf32>, vector<16x512xf32>, vector<8x512xf32> -> vector<8x512xf32>
    %c0_86 = arith.constant 0 : index
    %c112_87 = arith.constant 112 : index
    %164 = vector.load %arg13[%c0_86, %c112_87] : memref<16x768xf32, #tpu.memory_space<vmem>>, vector<16x512xf32>
    %165 = vector.broadcast %34 : vector<1x512xf32> to vector<16x512xf32>
    %166 = arith.mulf %164, %165 : vector<16x512xf32>
    %c0_88 = arith.constant 0 : index
    %c16_89 = arith.constant 16 : index
    %167 = vector.load %arg7[%c0_88, %c16_89] : memref<8x144xf32, #tpu.memory_space<vmem>>, vector<8x16xf32>
    %cst_90 = arith.constant dense<0.000000e+00> : vector<8x512xf32>
    %168 = tpu.matmul %167, %166, %cst_90 {dimension_numbers = #tpu.dot_dimension_numbers<[1], [0], [0], [1], [0, 0, 1, 1], [], []>} : vector<8x16xf32>, vector<16x512xf32>, vector<8x512xf32> -> vector<8x512xf32>
    %169 = arith.addf %163, %168 : vector<8x512xf32>
    %c0_91 = arith.constant 0 : index
    %c113_92 = arith.constant 113 : index
    %170 = vector.load %arg13[%c0_91, %c113_92] : memref<16x768xf32, #tpu.memory_space<vmem>>, vector<16x512xf32>
    %171 = arith.mulf %34, %30 : vector<1x512xf32>
    %172 = vector.broadcast %171 : vector<1x512xf32> to vector<16x512xf32>
    %173 = arith.mulf %170, %172 : vector<16x512xf32>
    %c0_93 = arith.constant 0 : index
    %c32_94 = arith.constant 32 : index
    %174 = vector.load %arg7[%c0_93, %c32_94] : memref<8x144xf32, #tpu.memory_space<vmem>>, vector<8x16xf32>
    %cst_95 = arith.constant dense<0.000000e+00> : vector<8x512xf32>
    %175 = tpu.matmul %174, %173, %cst_95 {dimension_numbers = #tpu.dot_dimension_numbers<[1], [0], [0], [1], [0, 0, 1, 1], [], []>} : vector<8x16xf32>, vector<16x512xf32>, vector<8x512xf32> -> vector<8x512xf32>
    %176 = arith.addf %169, %175 : vector<8x512xf32>
    %c0_96 = arith.constant 0 : index
    %c127_97 = arith.constant 127 : index
    %177 = vector.load %arg13[%c0_96, %c127_97] : memref<16x768xf32, #tpu.memory_space<vmem>>, vector<16x512xf32>
    %178 = vector.broadcast %26 : vector<1x512xf32> to vector<16x512xf32>
    %179 = arith.mulf %177, %178 : vector<16x512xf32>
    %c0_98 = arith.constant 0 : index
    %c48_99 = arith.constant 48 : index
    %180 = vector.load %arg7[%c0_98, %c48_99] : memref<8x144xf32, #tpu.memory_space<vmem>>, vector<8x16xf32>
    %cst_100 = arith.constant dense<0.000000e+00> : vector<8x512xf32>
    %181 = tpu.matmul %180, %179, %cst_100 {dimension_numbers = #tpu.dot_dimension_numbers<[1], [0], [0], [1], [0, 0, 1, 1], [], []>} : vector<8x16xf32>, vector<16x512xf32>, vector<8x512xf32> -> vector<8x512xf32>
    %182 = arith.addf %176, %181 : vector<8x512xf32>
    %c0_101 = arith.constant 0 : index
    %c128_102 = arith.constant 128 : index
    %183 = vector.load %arg13[%c0_101, %c128_102] : memref<16x768xf32, #tpu.memory_space<vmem>>, vector<16x512xf32>
    %c0_103 = arith.constant 0 : index
    %c64_104 = arith.constant 64 : index
    %184 = vector.load %arg7[%c0_103, %c64_104] : memref<8x144xf32, #tpu.memory_space<vmem>>, vector<8x16xf32>
    %cst_105 = arith.constant dense<0.000000e+00> : vector<8x512xf32>
    %185 = tpu.matmul %184, %183, %cst_105 {dimension_numbers = #tpu.dot_dimension_numbers<[1], [0], [0], [1], [0, 0, 1, 1], [], []>} : vector<8x16xf32>, vector<16x512xf32>, vector<8x512xf32> -> vector<8x512xf32>
    %186 = arith.addf %182, %185 : vector<8x512xf32>
    %c0_106 = arith.constant 0 : index
    %c129_107 = arith.constant 129 : index
    %187 = vector.load %arg13[%c0_106, %c129_107] : memref<16x768xf32, #tpu.memory_space<vmem>>, vector<16x512xf32>
    %188 = vector.broadcast %30 : vector<1x512xf32> to vector<16x512xf32>
    %189 = arith.mulf %187, %188 : vector<16x512xf32>
    %c0_108 = arith.constant 0 : index
    %c80 = arith.constant 80 : index
    %190 = vector.load %arg7[%c0_108, %c80] : memref<8x144xf32, #tpu.memory_space<vmem>>, vector<8x16xf32>
    %cst_109 = arith.constant dense<0.000000e+00> : vector<8x512xf32>
    %191 = tpu.matmul %190, %189, %cst_109 {dimension_numbers = #tpu.dot_dimension_numbers<[1], [0], [0], [1], [0, 0, 1, 1], [], []>} : vector<8x16xf32>, vector<16x512xf32>, vector<8x512xf32> -> vector<8x512xf32>
    %192 = arith.addf %186, %191 : vector<8x512xf32>
    %c0_110 = arith.constant 0 : index
    %c143_111 = arith.constant 143 : index
    %193 = vector.load %arg13[%c0_110, %c143_111] : memref<16x768xf32, #tpu.memory_space<vmem>>, vector<16x512xf32>
    %194 = arith.mulf %38, %26 : vector<1x512xf32>
    %195 = vector.broadcast %194 : vector<1x512xf32> to vector<16x512xf32>
    %196 = arith.mulf %193, %195 : vector<16x512xf32>
    %c0_112 = arith.constant 0 : index
    %c96 = arith.constant 96 : index
    %197 = vector.load %arg7[%c0_112, %c96] : memref<8x144xf32, #tpu.memory_space<vmem>>, vector<8x16xf32>
    %cst_113 = arith.constant dense<0.000000e+00> : vector<8x512xf32>
    %198 = tpu.matmul %197, %196, %cst_113 {dimension_numbers = #tpu.dot_dimension_numbers<[1], [0], [0], [1], [0, 0, 1, 1], [], []>} : vector<8x16xf32>, vector<16x512xf32>, vector<8x512xf32> -> vector<8x512xf32>
    %199 = arith.addf %192, %198 : vector<8x512xf32>
    %c0_114 = arith.constant 0 : index
    %c144_115 = arith.constant 144 : index
    %200 = vector.load %arg13[%c0_114, %c144_115] : memref<16x768xf32, #tpu.memory_space<vmem>>, vector<16x512xf32>
    %201 = vector.broadcast %38 : vector<1x512xf32> to vector<16x512xf32>
    %202 = arith.mulf %200, %201 : vector<16x512xf32>
    %c0_116 = arith.constant 0 : index
    %c112_117 = arith.constant 112 : index
    %203 = vector.load %arg7[%c0_116, %c112_117] : memref<8x144xf32, #tpu.memory_space<vmem>>, vector<8x16xf32>
    %cst_118 = arith.constant dense<0.000000e+00> : vector<8x512xf32>
    %204 = tpu.matmul %203, %202, %cst_118 {dimension_numbers = #tpu.dot_dimension_numbers<[1], [0], [0], [1], [0, 0, 1, 1], [], []>} : vector<8x16xf32>, vector<16x512xf32>, vector<8x512xf32> -> vector<8x512xf32>
    %205 = arith.addf %199, %204 : vector<8x512xf32>
    %c0_119 = arith.constant 0 : index
    %c145_120 = arith.constant 145 : index
    %206 = vector.load %arg13[%c0_119, %c145_120] : memref<16x768xf32, #tpu.memory_space<vmem>>, vector<16x512xf32>
    %207 = arith.mulf %38, %30 : vector<1x512xf32>
    %208 = vector.broadcast %207 : vector<1x512xf32> to vector<16x512xf32>
    %209 = arith.mulf %206, %208 : vector<16x512xf32>
    %c0_121 = arith.constant 0 : index
    %c128_122 = arith.constant 128 : index
    %210 = vector.load %arg7[%c0_121, %c128_122] : memref<8x144xf32, #tpu.memory_space<vmem>>, vector<8x16xf32>
    %cst_123 = arith.constant dense<0.000000e+00> : vector<8x512xf32>
    %211 = tpu.matmul %210, %209, %cst_123 {dimension_numbers = #tpu.dot_dimension_numbers<[1], [0], [0], [1], [0, 0, 1, 1], [], []>} : vector<8x16xf32>, vector<16x512xf32>, vector<8x512xf32> -> vector<8x512xf32>
    %212 = arith.addf %205, %211 : vector<8x512xf32>
    %c0_124 = arith.constant 0 : index
    %c0_125 = arith.constant 0 : index
    %213 = vector.load %arg8[%c0_124, %c0_125] : memref<8x1xf32, #tpu.memory_space<vmem>>, vector<8x1xf32>
    %214 = vector.broadcast %213 : vector<8x1xf32> to vector<8x512xf32>
    %215 = arith.addf %212, %214 : vector<8x512xf32>
    %cst_126 = arith.constant 0.000000e+00 : f32
    %216 = vector.broadcast %cst_126 : f32 to vector<8x512xf32>
    %217 = arith.cmpf ogt, %215, %216 : vector<8x512xf32>
    %cst_127 = arith.constant 0.000000e+00 : f32
    %218 = vector.broadcast %cst_127 : f32 to vector<8x512xf32>
    %219 = arith.minimumf %215, %218 : vector<8x512xf32>
    %220 = math.exp %219 : vector<8x512xf32>
    %cst_128 = arith.constant 1.000000e+00 : f32
    %221 = vector.broadcast %cst_128 : f32 to vector<8x512xf32>
    %222 = arith.subf %220, %221 : vector<8x512xf32>
    %223 = arith.select %217, %215, %222 : vector<8x512xi1>, vector<8x512xf32>
    %cst_129 = arith.constant dense<0.000000e+00> : vector<8xf32>
    %224 = vector.multi_reduction <add>, %223, %cst_129 [1] : vector<8x512xf32> to vector<8xf32>
    %225 = vector.shape_cast %224 : vector<8xf32> to vector<8x1xf32>
    %cst_130 = arith.constant 5.120000e+02 : f32
    %226 = vector.broadcast %cst_130 : f32 to vector<8x1xf32>
    %227 = arith.divf %225, %226 : vector<8x1xf32>
    %228 = vector.broadcast %227 : vector<8x1xf32> to vector<8x512xf32>
    %229 = arith.subf %223, %228 : vector<8x512xf32>
    %230 = arith.mulf %229, %229 : vector<8x512xf32>
    %cst_131 = arith.constant dense<0.000000e+00> : vector<8xf32>
    %231 = vector.multi_reduction <add>, %230, %cst_131 [1] : vector<8x512xf32> to vector<8xf32>
    %232 = vector.shape_cast %231 : vector<8xf32> to vector<8x1xf32>
    %cst_132 = arith.constant 5.120000e+02 : f32
    %233 = vector.broadcast %cst_132 : f32 to vector<8x1xf32>
    %234 = arith.divf %232, %233 : vector<8x1xf32>
    %cst_133 = arith.constant 0.000000e+00 : f32
    %235 = vector.broadcast %cst_133 : f32 to vector<8x1xf32>
    %236 = arith.maximumf %234, %235 : vector<8x1xf32>
    %c0_134 = arith.constant 0 : index
    %c0_135 = arith.constant 0 : index
    %237 = vector.load %arg9[%c0_134, %c0_135] : memref<8x1xf32, #tpu.memory_space<vmem>>, vector<8x1xf32>
    %cst_136 = arith.constant 5.000000e-03 : f32
    %238 = vector.broadcast %cst_136 : f32 to vector<8x1xf32>
    %239 = arith.addf %236, %238 : vector<8x1xf32>
    %240 = math.rsqrt %239 : vector<8x1xf32>
    %241 = arith.mulf %237, %240 : vector<8x1xf32>
    %242 = vector.broadcast %241 : vector<8x1xf32> to vector<8x512xf32>
    %243 = arith.mulf %229, %242 : vector<8x512xf32>
    %c0_137 = arith.constant 0 : index
    %c0_138 = arith.constant 0 : index
    %244 = vector.load %arg10[%c0_137, %c0_138] : memref<8x1xf32, #tpu.memory_space<vmem>>, vector<8x1xf32>
    %245 = vector.broadcast %244 : vector<8x1xf32> to vector<8x512xf32>
    %246 = arith.addf %243, %245 : vector<8x512xf32>
    %247 = vector.extract_strided_slice %246 {offsets = [0, 0], sizes = [8, 256], strides = [1, 1]} : vector<8x512xf32> to vector<8x256xf32>
    %c0_139 = arith.constant 0 : index
    %c0_140 = arith.constant 0 : index
    %c0_141 = arith.constant 0 : index
    %248 = vector.load %arg11[%c0_139, %c0_140, %c0_141] : memref<2x8x256xf32, #tpu.memory_space<vmem>>, vector<1x8x256xf32>
    %249 = vector.shape_cast %248 : vector<1x8x256xf32> to vector<8x256xf32>
    %250 = vector.shape_cast %247 : vector<8x256xf32> to vector<1x8x256xf32>
    tpu.vector_store %arg11[%c0_139, %c0_140, %c0_141], %250 {strides = array<i32>} : memref<2x8x256xf32, #tpu.memory_space<vmem>>, vector<1x8x256xf32>,
    %251 = vector.extract_strided_slice %246 {offsets = [0, 256], sizes = [8, 256], strides = [1, 1]} : vector<8x512xf32> to vector<8x256xf32>
    %c1_142 = arith.constant 1 : index
    %c0_143 = arith.constant 0 : index
    %c0_144 = arith.constant 0 : index
    %252 = vector.load %arg11[%c1_142, %c0_143, %c0_144] : memref<2x8x256xf32, #tpu.memory_space<vmem>>, vector<1x8x256xf32>
    %253 = vector.shape_cast %252 : vector<1x8x256xf32> to vector<8x256xf32>
    %254 = vector.shape_cast %251 : vector<8x256xf32> to vector<1x8x256xf32>
    tpu.vector_store %arg11[%c1_142, %c0_143, %c0_144], %254 {strides = array<i32>} : memref<2x8x256xf32, #tpu.memory_space<vmem>>, vector<1x8x256xf32>,
    return
  }
  func.func @transform_0(%arg0: i32) -> (i32, i32) {
    %c0_i32 = arith.constant 0 : i32
    %c0_i32_0 = arith.constant 0 : i32
    %c0_i32_1 = arith.constant 0 : i32
    return %c0_i32, %c0_i32_0 : i32, i32
  }
  func.func @transform_1(%arg0: i32) -> (i32, i32, i32) {
    %c0_i32 = arith.constant 0 : i32
    %c0_i32_0 = arith.constant 0 : i32
    %c0_i32_1 = arith.constant 0 : i32
    %c0_i32_2 = arith.constant 0 : i32
    return %c0_i32, %c0_i32_0, %c0_i32_1 : i32, i32, i32
  }
  func.func @transform_2(%arg0: i32) -> (i32, i32) {
    %c0_i32 = arith.constant 0 : i32
    %c0_i32_0 = arith.constant 0 : i32
    %c0_i32_1 = arith.constant 0 : i32
    return %c0_i32, %c0_i32_0 : i32, i32
  }
  func.func @transform_3(%arg0: i32) -> (i32, i32) {
    %c0_i32 = arith.constant 0 : i32
    %c0_i32_0 = arith.constant 0 : i32
    %c0_i32_1 = arith.constant 0 : i32
    return %c0_i32, %c0_i32_0 : i32, i32
  }
  func.func @transform_4(%arg0: i32) -> (i32, i32) {
    %c0_i32 = arith.constant 0 : i32
    %c0_i32_0 = arith.constant 0 : i32
    %c0_i32_1 = arith.constant 0 : i32
    return %c0_i32, %c0_i32_0 : i32, i32
  }
  func.func @transform_5(%arg0: i32) -> (i32, i32) {
    %c0_i32 = arith.constant 0 : i32
    %c0_i32_0 = arith.constant 0 : i32
    %c0_i32_1 = arith.constant 0 : i32
    return %c0_i32, %c0_i32_0 : i32, i32
  }
  func.func @transform_6(%arg0: i32) -> (i32, i32) {
    %c0_i32 = arith.constant 0 : i32
    %c0_i32_0 = arith.constant 0 : i32
    %c0_i32_1 = arith.constant 0 : i32
    return %c0_i32, %c0_i32_0 : i32, i32
  }
  func.func @transform_7(%arg0: i32) -> (i32, i32) {
    %c0_i32 = arith.constant 0 : i32
    %c0_i32_0 = arith.constant 0 : i32
    %c0_i32_1 = arith.constant 0 : i32
    return %c0_i32, %c0_i32_0 : i32, i32
  }
  func.func @transform_8(%arg0: i32) -> (i32, i32) {
    %c0_i32 = arith.constant 0 : i32
    %c0_i32_0 = arith.constant 0 : i32
    %c0_i32_1 = arith.constant 0 : i32
    return %c0_i32, %c0_i32_0 : i32, i32
  }
  func.func @transform_9(%arg0: i32) -> (i32, i32) {
    %c0_i32 = arith.constant 0 : i32
    %c0_i32_0 = arith.constant 0 : i32
    %c0_i32_1 = arith.constant 0 : i32
    return %c0_i32, %c0_i32_0 : i32, i32
  }
  func.func @transform_10(%arg0: i32) -> (i32, i32, i32) {
    %c0_i32 = arith.constant 0 : i32
    %c0_i32_0 = arith.constant 0 : i32
    %c0_i32_1 = arith.constant 0 : i32
    %c0_i32_2 = arith.constant 0 : i32
    return %c0_i32, %c0_i32_0, %c0_i32_1 : i32, i32, i32
  }
  func.func @transform_11(%arg0: i32) -> (i32, i32, i32) {
    %c0_i32 = arith.constant 0 : i32
    %c0_i32_0 = arith.constant 0 : i32
    %c0_i32_1 = arith.constant 0 : i32
    %c0_i32_2 = arith.constant 0 : i32
    return %c0_i32, %c0_i32_0, %c0_i32_1 : i32, i32, i32
  }
}

</mosaic_0001>

<bundles_post_ra>
// kernel: upscale_block_forward.1
= control target key start
LH: loop header
LB: loop body
LE: loop exit
PB: predicated region body
PF: predicated region fallthrough
CT: control target
= control target key end

     0   :  { %v37_v0 = vlaneseq  ;;  %v5774_v1 = vmov 0.0   ;;  %v4588_v35 = vmov 1.0|1.0   ;;  %s4589_s19 = smov 111   ;;  %s4590_s20 = smov 112   ;;  %s5762_s1 = inlined_call_operand.vmem [shape: f32[2,4,256], index: 1, kind: input, shape index: {}]   ;;  %s5763_s0 = inlined_call_operand.vmem [shape: f32[16,64], index: 0, kind: input, shape index: {}]   ;;  %s5764_s2 = inlined_call_operand.vmem [shape: f32[8,72], index: 2, kind: input, shape index: {}]   ;;  %s5765_s3 = inlined_call_operand.vmem [shape: f32[8,1], index: 3, kind: input, shape index: {}]   ;;  %s5766_s5 = inlined_call_operand.vmem [shape: f32[8,1], index: 5, kind: input, shape index: {}]   ;;  %s5767_s6 = inlined_call_operand.vmem [shape: f32[8,144], index: 6, kind: input, shape index: {}]   ;;  %s5768_s11 = inlined_call_operand.vmem [shape: f32[2,12,256], index: 11, kind: output, shape index: {1}]   ;;  %s5769_s4 = inlined_call_operand.vmem [shape: f32[8,1], index: 4, kind: input, shape index: {}]   ;;  %s5770_s7 = inlined_call_operand.vmem [shape: f32[8,1], index: 7, kind: input, shape index: {}]   ;;  %s5771_s9 = inlined_call_operand.vmem [shape: f32[8,1], index: 9, kind: input, shape index: {}]   ;;  %s5772_s8 = inlined_call_operand.vmem [shape: f32[8,1], index: 8, kind: input, shape index: {}]   ;;  %s5773_s10 = inlined_call_operand.vmem [shape: f32[2,8,256], index: 10, kind: output, shape index: {0}]  }
   0x1   :  { %256 = vmatprep.mubr.f32.mxu0 %v5774_v1  ;;  %171 = vst [vmem:[#allocation2] sm:$0xff] %v5774_v1  ;;  %178 = vst [vmem:[#allocation2 + $0x38] sm:$0xff] %v5774_v1  ;;  %262 = vmatprep.mubr.f32.mxu1 %v5774_v1  ;;  %v4689_v26 = vld [vmem:[%s5762_s1] sm:$0xff]  ;;  %v4810_v53 = vld [vmem:[%s5762_s1 + $0x8] sm:$0xff]  ;;  %s4591_s26 = smov 113   ;;  %s4593_s27 = smov 1  }
   0x2   :  { %179 = vst [vmem:[#allocation2 + $0x40] sm:$0xff] %v5774_v1  ;;  %180 = vst [vmem:[#allocation2 + $0x48] sm:$0xff] %v5774_v1  ;;  %v38_v2 = vand.u32 127, %v37_v0  ;;  %v41_v3 = vshrl.u32 %v37_v0, 7  ;;  %v183_v62 = vld [vmem:[%s5763_s0] sm:$0xff]  ;;  %v184_v63 = vld [vmem:[%s5763_s0 + $0x8] sm:$0xff] }
   0x3   :  { %181 = vst [vmem:[#allocation2 + $0x50] sm:$0xff] %v5774_v1  ;;  %2123 = vst [vmem:[#allocation2 + $0x38] sm:$0xf] %v4689_v26  ;;  %s4592_s0 = smov 127   ;;  %s4594_s28 = smov 15  }
   0x4   :  { %v39_v4 = vadd.s32 128, %v38_v2  ;;  %v49_v5 = vshra.s32 %v38_v2, 4  ;;  %v51_v6 = vand.u32 15, %v38_v2  ;;  %v42_v11 = vadd.s32 8, %v41_v3  ;;  %2137 = vst [vmem:[#allocation2 + $0x48] sm:$0xf] %v4810_v53 }
   0x5   :  { %v111_v12 = vand.u32 255, %v38_v2  ;;  %v4674_v17 = vadd.s32 256, %v38_v2  ;;  %v43_v24 = vadd.s32 16, %v41_v3  ;;  %v44_v25 = vadd.s32 24, %v41_v3  ;;  %s4595_s29 = smov 16   ;;  %s4596_s13 = smov 120  }
   0x6   :  { %v50_v7 = vshra.s32 %v39_v4, 4  ;;  %v52_v8 = vand.u32 15, %v39_v4  ;;  %v53_v9 = vshra.s32 %v49_v5, 1  ;;  %v57_v10 = vshra.s32 %v51_v6, 1  ;;  %s4597_s14 = smov 17   ;;  %s4599_s15 = smov 96  }
   0x7   :  { %v112_v13 = vand.u32 255, %v39_v4  ;;  %v4676_v18 = vand.u32 15, %v111_v12  ;;  %v4678_v19 = vshra.s32 %v111_v12, 4  ;;  %v4691_v27 = vadd.s32 32, %v41_v3  ;;  %s4600_s16 = smov 88   ;;  %s4601_s17 = smov 80  }
   0x8   :  { %v54_v14 = vshra.s32 %v50_v7, 1  ;;  %v58_v15 = vshra.s32 %v52_v8, 1  ;;  %v55_v16 = vmul.u32 8, %v53_v9  ;;  %v4693_v28 = vadd.s32 40, %v41_v3  ;;  %s4602_s18 = smov 72   ;;  %s4604_s21 = smov 64  }
   0x9   :  { %v4680_v20 = vshra.s32 %v112_v13, 4  ;;  %v4682_v21 = vand.u32 15, %v112_v13  ;;  %v4695_v29 = vadd.s32 48, %v41_v3  ;;  %v110_v30 = vadd.s32 384, %v38_v2  ;;  %2119 = vst [vmem:[%s5768_s11 + $0x10] sm:$0xf] %v4689_v26 }
   0xa   :  { %v56_v22 = vmul.u32 8, %v54_v14  ;;  %v4684_v23 = vadd.s32 %v57_v10, %v55_v16  ;;  %v113_v32 = vand.u32 255, %v4674_v17  ;;  %vm123_vm2 = vcmp.ne.s32.totalorder %v4676_v18, 0  ;;  %4115 = vst [vmem:[%s5768_s11 + $0x30] sm:$0xf] %v4810_v53 }
   0xb   :  { %vm147_vm3 = vcmp.ne.s32.totalorder %v4678_v19, 0  ;;  %vm148_vm4 = vcmp.ne.s32.totalorder %v4680_v20, 0  ;;  %vm124_vm5 = vcmp.ne.s32.totalorder %v4682_v21, 0  ;;  %v48_v34 = vadd.s32 56, %v41_v3 }
   0xc   :  { %v4698_v31 = vadd.s32 %v58_v15, %v56_v22  ;;  %vm61_vm0 = vcmp.eq.s32.totalorder %v41_v3, %v4684_v23  ;;  %vm63_vm1 = vcmp.eq.s32.totalorder %v42_v11, %v4684_v23  ;;  %vm65_vm12 = vcmp.eq.s32.totalorder %v43_v24, %v4684_v23 }
   0xd   :  { %vm4709_vm8 = vmpackc.low %vm63_vm1, %vm61_vm0  ;;  %vm67_vm13 = vcmp.eq.s32.totalorder %v44_v25, %v4684_v23  ;;  %v4726_v36 = vsel %vm123_vm2, 1.0, %v5774_v1  ;;  %v4064_v37 = vsel %vm147_vm3, 1.0, %v5774_v1  ;;  %v4065_v38 = vsel %vm148_vm4, 1.0, %v5774_v1 }
   0xe   :  { %vm62_vm6 = vcmp.eq.s32.totalorder %v41_v3, %v4698_v31  ;;  %vm64_vm7 = vcmp.eq.s32.totalorder %v42_v11, %v4698_v31  ;;  %vm66_vm9 = vcmp.eq.s32.totalorder %v43_v24, %v4698_v31  ;;  %vm68_vm10 = vcmp.eq.s32.totalorder %v44_v25, %v4698_v31  ;;  %vm4752_vm1 = vmpackc.low %vm67_vm13, %vm65_vm12 }
   0xf   :  { %vm4141_vm11 = vmpackc.low %vm64_vm7, %vm62_vm6  ;;  %vm70_vm14 = vcmp.eq.s32.totalorder %v4691_v27, %v4698_v31  ;;  %vm72_vm0 = vcmp.eq.s32.totalorder %v4693_v28, %v4698_v31  ;;  %v278_v39 = vmul.f32 %v4064_v37, %v4726_v36  ;;  %v4321_v40 = vpack.i.bf16 %v4065_v38, %v4064_v37 }
  0x10   :  { %4142 = vmatprep.subr.msk.bf16.mxu0 %vm4141_vm11, %v4588_v35  ;;  %4229 = vmatprep.subr.msk.bf16.mxu1 %vm4141_vm11, %v4588_v35  ;;  %vm4145_vm15 = vmpackc.low %vm68_vm10, %vm66_vm9  ;;  %v4744_v41 = vsel %vm124_vm5, 1.0, %v5774_v1  ;;  %v114_v42 = vand.u32 255, %v110_v30  ;;  %vm69_vm2 = vcmp.eq.s32.totalorder %v4691_v27, %v4684_v23  ;;  %vm71_vm3 = vcmp.eq.s32.totalorder %v4693_v28, %v4684_v23 }
  0x11   :  { %4144 = vmatpush1.bf16.msk.msra.mxu0 %vm4709_vm8, %v4588_v35  ;;  %4233 = vmatpush1.bf16.msk.msra.mxu1 %vm4709_vm8, %v4588_v35  ;;  %v4760_v44 = vshra.s32 %v113_v32, 4  ;;  %vm4768_vm4 = vmpackc.low %vm72_vm0, %vm70_vm14  ;;  %vm74_vm5 = vcmp.eq.s32.totalorder %v4695_v29, %v4698_v31  ;;  %v279_v46 = vmul.f32 %v4065_v38, %v4744_v41  ;;  %vm76_vm6 = vcmp.eq.s32.totalorder %v48_v34, %v4698_v31 }
  0x12   :  { %4146 = vmatprep.subr.msk.bf16.mxu0 %vm4145_vm15, %v4588_v35  ;;  %4230 = vmatprep.subr.msk.bf16.mxu1 %vm4145_vm15, %v4588_v35  ;;  %v4777_v47 = vshra.s32 %v114_v42, 4  ;;  %v118_v48 = vand.u32 15, %v114_v42  ;;  %vm135_vm8 = vcmp.ne.s32.totalorder %v4676_v18, 15  ;;  %vm136_vm9 = vcmp.ne.s32.totalorder %v4682_v21, 15  ;;  %vm4151_vm12 = vmpackc.low %vm71_vm3, %vm69_vm2  ;;  %v4901_v21 = vld [vmem:[%s5764_s2] sm:$0xff]  ;;  %s4598_s2 = smov 104  }
  0x13   :  { %286 = vrot.lane.b32.xlu1 %v278_v39, %s4589_s19  ;;  %4322 = vrot.lane.b32.xlu0 %v4321_v40, %s4590_s20  ;;  %vm149_vm7 = vcmp.ne.s32.totalorder %v4760_v44, 0  ;;  %v117_v50 = vand.u32 15, %v113_v32  ;;  %vm4153_vm13 = vmpackc.low %vm76_vm6, %vm74_vm5  ;;  %vm73_vm14 = vcmp.eq.s32.totalorder %v4695_v29, %v4684_v23  ;;  %vm75_vm15 = vcmp.eq.s32.totalorder %v48_v34, %v4684_v23 }
  0x14   :  { %vm150_vm10 = vcmp.ne.s32.totalorder %v4777_v47, 0  ;;  %v4066_v49 = vsel %vm149_vm7, 1.0, %v5774_v1  ;;  %vm126_vm11 = vcmp.ne.s32.totalorder %v118_v48, 0  ;;  %v4826_v56 = vsel %vm135_vm8, 1.0, %v5774_v1  ;;  %vm4155_vm2 = vmpackc.low %vm75_vm15, %vm73_vm14 }
  0x15   :  { %4148 = vmatpush1.bf16.msk.msra.mxu0 %vm4752_vm1, %v4588_v35  ;;  %4234 = vmatpush1.bf16.msk.msra.mxu1 %vm4752_vm1, %v4588_v35  ;;  %v4067_v51 = vsel %vm150_vm10, 1.0, %v5774_v1  ;;  %v4805_v52 = vsel %vm126_vm11, 1.0, %v5774_v1  ;;  %v4831_v57 = vsel %vm136_vm9, 1.0, %v5774_v1  ;;  %vm125_vm0 = vcmp.ne.s32.totalorder %v117_v50, 0 }
  0x16   :  { %4150 = vmatprep.subr.msk.bf16.mxu0 %vm4768_vm4, %v4588_v35  ;;  %4231 = vmatprep.subr.msk.bf16.mxu1 %vm4768_vm4, %v4588_v35  ;;  %v4326_v54 = vpack.i.bf16 %v4067_v51, %v4066_v49  ;;  %v281_v55 = vmul.f32 %v4067_v51, %v4805_v52  ;;  %vm138_vm1 = vcmp.ne.s32.totalorder %v118_v48, 15  ;;  %v675_v58 = vmul.f32 %v4064_v37, %v4826_v56 }
  0x17   :  { %288 = vrot.lane.b32.xlu1 %v279_v46, %s4589_s19  ;;  %v676_v59 = vmul.f32 %v4065_v38, %v4831_v57  ;;  %v4058_v60 = vsel %vm125_vm0, 1.0, %v5774_v1  ;;  %v4843_v61 = vsel %vm138_vm1, 1.0, %v5774_v1  ;;  %vm185_vm3 = vcmask 523264  }
  0x18   :  { %4327 = vrot.lane.b32.xlu0 %v4326_v54, %s4590_s20  ;;  %vm137_vm4 = vcmp.ne.s32.totalorder %v117_v50, 15  ;;  %v280_v0 = vmul.f32 %v4066_v49, %v4058_v60  ;;  %v678_v2 = vmul.f32 %v4067_v51, %v4843_v61  ;;  %v4858_v3 = vcombine.high %v4689_v26, %v4689_v26  ;;  %v2090_v26 = vld [vmem:[%s5769_s4] sm:$0xff] }
  0x19   :  { %4152 = vmatpush1.bf16.msk.msra.mxu0 %vm4151_vm12, %v4588_v35  ;;  %4235 = vmatpush1.bf16.msk.msra.mxu1 %vm4151_vm12, %v4588_v35  ;;  %v4062_v4 = vsel %vm137_vm4, 1.0, %v5774_v1  ;;  %v4336_v6 = vpack.i.bf16 %v4805_v52, %v4058_v60  ;;  %vm160_vm5 = vcmp.ne.s32.totalorder %v4680_v20, 15  ;;  %v4331_v7 = vpack.i.bf16 %v4744_v41, %v4726_v36 }
  0x1a   :  { %4154 = vmatprep.subr.msk.bf16.mxu0 %vm4153_vm13, %v4588_v35  ;;  %4232 = vmatprep.subr.msk.bf16.mxu1 %vm4153_vm13, %v4588_v35  ;;  %2124 = vst [vmem:[#allocation2 + $0x40] sm:$0xf] %v4858_v3  ;;  %v677_v5 = vmul.f32 %v4066_v49, %v4062_v4  ;;  %v4346_v8 = vpack.i.bf16 %v4843_v61, %v4062_v4  ;;  %v4069_v9 = vsel %vm160_vm5, 1.0, %v5774_v1  ;;  %vm159_vm6 = vcmp.ne.s32.totalorder %v4678_v19, 15 }
  0x1b   :  { %292 = vrot.lane.b32.xlu1 %v281_v55, %s4589_s19  ;;  %vm162_vm7 = vcmp.ne.s32.totalorder %v4777_v47, 15  ;;  %v4878_v10 = vcombine.high %v4810_v53, %v4810_v53  ;;  %v4341_v11 = vpack.i.bf16 %v4831_v57, %v4826_v56  ;;  %v1433_v12 = vmul.f32 %v4069_v9, %v4744_v41  ;;  %2120 = vst [vmem:[%s5768_s11 + $0x18] sm:$0xf] %v4858_v3 }
  0x1c   :  { %683 = vrot.lane.b32.xlu0 %v675_v58, %s4591_s26  ;;  %v4068_v13 = vsel %vm159_vm6, 1.0, %v5774_v1  ;;  %v4071_v14 = vsel %vm162_vm7, 1.0, %v5774_v1  ;;  %vm161_vm8 = vcmp.ne.s32.totalorder %v4760_v44, 15  ;;  %v1833_v23 = vmul.f32 %v4069_v9, %v4831_v57 }
  0x1d   :  { %4156 = vmatpush1.bf16.msk.msra.mxu0 %vm4155_vm2, %v4588_v35  ;;  %4236 = vmatpush1.bf16.msk.msra.mxu1 %vm4155_vm2, %v4588_v35  ;;  %2138 = vst [vmem:[#allocation2 + $0x50] sm:$0xf] %v4878_v10  ;;  %v1432_v15 = vmul.f32 %v4068_v13, %v4726_v36  ;;  %v1435_v16 = vmul.f32 %v4071_v14, %v4805_v52  ;;  %v4070_v17 = vsel %vm161_vm8, 1.0, %v5774_v1  ;;  %vm321_vm9 = vcmask 916480   ;;  %4116 = vst [vmem:[%s5768_s11 + $0x38] sm:$0xf] %v4878_v10 }
  0x1e   :  { %v1434_v18 = vmul.f32 %v4070_v17, %v4058_v60  ;;  %v4356_v19 = vpack.i.bf16 %v4071_v14, %v4070_v17  ;;  %v4351_v20 = vpack.i.bf16 %v4069_v9, %v4068_v13  ;;  %v1832_v22 = vmul.f32 %v4068_v13, %v4826_v56 }
  0x1f   :  { %685 = vrot.lane.b32.xlu1 %v676_v59, %s4591_s26  ;;  %v1834_v24 = vmul.f32 %v4070_v17, %v4062_v4  ;;  %v1835_v25 = vmul.f32 %v4071_v14, %v4843_v61  ;;  %vm294_vm10 = vcmask 908288   ;;  %vm691_vm11 = vcmask 924672  }
  0x20   :  { %4088 = vmatmul.mubr.msk.f32.vlgmr.msra.gmra.mrb[0].mxu0 %vm185_vm3, %v183_v62  ;;  %4089 = vmatmul.mubr.msk.f32.vlgmr.msra.gmra.mrb[0].mxu1 %vm185_vm3, %v184_v63  ;;  %vm891_vm12 = vcmask 1039360   ;;  %vm922_vm13 = vcmask 7168   ;;  %vm722_vm14 = vcmask 121856   ;;  %vm353_vm15 = vcmask 130048  }
  0x21   :  { %429 = vmatprep.mubr.f32.mxu1 %v5774_v1  ;;  %2285 = vmatprep.mubr.f32.mxu0 %v5774_v1  ;;  %vm522_vm0 = vcmask 138240   ;;  %vm362_vm1 = vcmask 64512  }
  0x22   :  { %290 = vrot.lane.b32.xlu0 %v280_v0, %s4589_s19 }
  0x23   :  { %689 = vrot.lane.b32.xlu1 %v678_v2, %s4591_s26 }
  0x26   :  { %687 = vrot.lane.b32.xlu0 %v677_v5, %s4591_s26 }
  0x27   :  { %4337 = vrot.lane.b32.xlu1 %v4336_v6, %s4592_s0 }
  0x2a   :  { %4332 = vrot.lane.b32.xlu0 %v4331_v7, %s4592_s0 }
  0x2b   :  { %4347 = vrot.lane.b32.xlu1 %v4346_v8, %s4593_s27 }
  0x2e   :  { %4342 = vrot.lane.b32.xlu0 %v4341_v11, %s4593_s27 }
  0x2f   :  { %1442 = vrot.lane.b32.xlu1 %v1433_v12, %s4594_s28 }
  0x32   :  { %1440 = vrot.lane.b32.xlu0 %v1432_v15, %s4594_s28 }
  0x33   :  { %1446 = vrot.lane.b32.xlu1 %v1435_v16, %s4594_s28 }
  0x36   :  { %1444 = vrot.lane.b32.xlu0 %v1434_v18, %s4594_s28 }
  0x37   :  { %4357 = vrot.lane.b32.xlu1 %v4356_v19, %s4595_s29 }
  0x3a   :  { %4352 = vrot.lane.b32.xlu0 %v4351_v20, %s4595_s29 }
  0x3b   :  { %336 = vrot.lane.b32.xlu1 %v4901_v21, %s4596_s13 }
  0x3e   :  { %1840 = vrot.lane.b32.xlu0 %v1832_v22, %s4597_s14 }
  0x3f   :  { %1842 = vrot.lane.b32.xlu1 %v1833_v23, %s4597_s14 }
  0x42   :  { %1844 = vrot.lane.b32.xlu0 %v1834_v24, %s4597_s14 }
  0x43   :  { %1846 = vrot.lane.b32.xlu1 %v1835_v25, %s4597_s14 }
  0x46   :  { %705 = vrot.lane.b32.xlu0 %v4901_v21, %s4590_s20 }
  0x85   :  { %v4323_v27 = vpop.permute.xlu0 %4322  ;;  %v4917_v30 = vpop.permute.xlu1 %286 }
  0x86   :  { %v4914_v28 = vunpack.i.l.bf16 %v4323_v27  ;;  %v303_v31 = vmul.f32 0.0, %v4917_v30  ;;  %v4325_v37 = vunpack.i.h.bf16 %v4323_v27 }
  0x88   :  { %v330_v29 = vmul.f32 0.0, %v4914_v28  ;;  %v4940_v45 = vsel %vm321_vm9, %v4914_v28, %v4325_v37 }
  0x89   :  { %v289_v35 = vpop.permute.xlu1 %288 }
  0x8a   :  { %343 = vrot.lane.b32.xlu0 %v330_v29, %s4595_s29  ;;  %v4328_v32 = vpop.permute.xlu0 %4327  ;;  %v4958_v52 = vsel %vm294_vm10, %v4917_v30, %v289_v35 }
  0x8b   :  { %v4926_v38 = vunpack.i.h.bf16 %v4328_v32  ;;  %v4329_v40 = vunpack.i.l.bf16 %v4328_v32 }
  0x8d   :  { %v4928_v39 = vpop.permute.xlu1 %292  ;;  %v4936_v44 = vsel %vm321_vm9, %v4329_v40, %v4926_v38  ;;  %v4994_v5 = vsel %vm321_vm9, %v4325_v37, %v4329_v40 }
  0x8e   :  { %512 = vrot.lane.b32.xlu0 %v303_v31, %s4597_s14  ;;  %v4922_v33 = vpop.permute.xlu0 %683 }
  0x8f   :  { %v700_v34 = vmul.f32 0.0, %v4922_v33 }
  0x91   :  { %712 = vrot.lane.b32.xlu1 %v700_v34, %s4594_s28  ;;  %v686_v51 = vpop.permute.xlu1 %685 }
  0x92   :  { %v4968_v57 = vsel %vm691_vm11, %v4922_v33, %v686_v51 }
  0x94   :  { %v291_v36 = vpop.permute.xlu0 %290 }
  0x95   :  { %v4952_v50 = vsel %vm294_vm10, %v291_v36, %v4928_v39  ;;  %v4970_v58 = vpop.permute.xlu1 %689  ;;  %v5015_v13 = vsel %vm294_vm10, %v289_v35, %v291_v36 }
  0x98   :  { %v688_v41 = vpop.permute.xlu0 %687 }
  0x99   :  { %v4978_v61 = vsel %vm691_vm11, %v688_v41, %v4970_v58  ;;  %v4338_v14 = vpop.permute.xlu1 %4337  ;;  %v5026_v19 = vsel %vm691_vm11, %v686_v51, %v688_v41 }
  0x9a   :  { %v5021_v17 = vunpack.i.h.bf16 %v4338_v14  ;;  %v4339_v18 = vunpack.i.l.bf16 %v4338_v14 }
  0x9c   :  { %v4333_v56 = vpop.permute.xlu0 %4332  ;;  %v5033_v23 = vsel %vm891_vm12, %v4339_v18, %v5021_v17 }
  0x9d   :  { %v4335_v2 = vunpack.i.h.bf16 %v4333_v56  ;;  %v4989_v4 = vunpack.i.l.bf16 %v4333_v56  ;;  %v4348_v24 = vpop.permute.xlu1 %4347 }
  0x9e   :  { %v4349_v29 = vunpack.i.l.bf16 %v4348_v24 }
  0x9f   :  { %v5002_v8 = vsel %vm891_vm12, %v4989_v4, %v4335_v2  ;;  %v900_v22 = vmul.f32 0.0, %v4989_v4  ;;  %v5043_v34 = vsel %vm891_vm12, %v4335_v2, %v4339_v18 }
  0xa0   :  { %v4982_v62 = vpop.permute.xlu0 %4342 }
  0xa1   :  { %v4985_v63 = vunpack.i.l.bf16 %v4982_v62  ;;  %v4345_v31 = vunpack.i.h.bf16 %v4982_v62 }
  0xa3   :  { %v5050_v36 = vsel %vm922_vm13, %v4345_v31, %v4349_v29  ;;  %v5079_v62 = vsel %vm922_vm13, %v4985_v63, %v4345_v31 }
  0xa4   :  { %v5006_v9 = vpop.permute.xlu0 %1440 }
  0xa8   :  { %v1445_v32 = vpop.permute.xlu0 %1444 }
  0xac   :  { %v4353_v37 = vpop.permute.xlu0 %4352 }
  0xad   :  { %v5055_v40 = vunpack.i.l.bf16 %v4353_v37 }
  0xaf   :  { %5797 = vst [vmem:[#allocation3_spill] sm:$0xff] %v5055_v40 }
  0xf3   :  { %v4930_v42 = vpop.f32.mrb[0].mxu0  ;;  %v4932_v43 = vpop.f32.mrb[0].mxu1 }
  0xf4   :  { %v4942_v46 = vpop.f32.mrb[1].mxu0  ;;  %v4944_v47 = vpop.f32.mrb[1].mxu1  ;;  %v333_v48 = vmul.f32 %v4936_v44, %v4932_v43  ;;  %v331_v49 = vmul.f32 %v4940_v45, %v4930_v42  ;;  %v306_v54 = vmul.f32 %v4952_v50, %v4932_v43  ;;  %v304_v55 = vmul.f32 %v4958_v52, %v4930_v42 }
  0xf5   :  { %v701_v59 = vmul.f32 %v4968_v57, %v4930_v42  ;;  %v334_v60 = vmul.f32 %v4926_v38, %v4944_v47  ;;  %v703_v0 = vmul.f32 %v4978_v61, %v4932_v43  ;;  %v1254_v6 = vmul.f32 %v4985_v63, %v4930_v42 }
  0xf6   :  { %349 = vrot.lane.b32.xlu1 %v333_v48, %s4595_s29  ;;  %345 = vrot.lane.b32.xlu0 %v331_v49, %s4595_s29  ;;  %v332_v7 = vmul.f32 %v4994_v5, %v4942_v46  ;;  %v1456_v11 = vmul.f32 %v5006_v9, %v4930_v42  ;;  %v901_v12 = vmul.f32 %v5002_v8, %v4930_v42  ;;  %v1443_v49 = vpop.permute.xlu1 %1442 }
  0xf7   :  { %v307_v15 = vmul.f32 %v4928_v39, %v4944_v47  ;;  %v305_v16 = vmul.f32 %v5015_v13, %v4942_v46  ;;  %v702_v20 = vmul.f32 %v5026_v19, %v4942_v46  ;;  %v704_v25 = vmul.f32 %v4970_v58, %v4944_v47 }
  0xf8   :  { %v903_v27 = vmul.f32 %v5033_v23, %v4932_v43  ;;  %v902_v35 = vmul.f32 %v5043_v34, %v4942_v46  ;;  %v904_v41 = vmul.f32 %v5021_v17, %v4944_v47  ;;  %v1256_v48 = vmul.f32 %v5050_v36, %v4932_v43 }
  0xf9   :  { %v1654_v51 = vmul.f32 %v5055_v40, %v4930_v42  ;;  %v1255_v2 = vmul.f32 %v5079_v62, %v4942_v46 }
  0xfa   :  { %518 = vrot.lane.b32.xlu1 %v306_v54, %s4597_s14  ;;  %514 = vrot.lane.b32.xlu0 %v304_v55, %s4597_s14  ;;  %v5065_v54 = vunpack.i.h.bf16 %v4348_v24  ;;  %v5069_v55 = vpop.permute.xlu0 %1840 }
  0xfb   :  { %5798 = vst [vmem:[#allocation4_spill] sm:$0xff] %v5069_v55  ;;  %v1856_v56 = vmul.f32 %v5069_v55, %v4930_v42 }
  0xfe   :  { %714 = vrot.lane.b32.xlu1 %v701_v59, %s4594_s28  ;;  %351 = vrot.lane.b32.xlu0 %v334_v60, %s4595_s29  ;;  %v1258_v59 = vmul.f32 0.0, %v5065_v54  ;;  %v5075_v60 = vsel %vm722_vm14, %v1443_v49, %v1445_v32 }
 0x102   :  { %718 = vrot.lane.b32.xlu1 %v703_v0, %s4594_s28  ;;  %905 = vrot.lane.b32.xlu0 %v4901_v21, %s4598_s2  ;;  %v5081_v0 = vpop.permute.xlu1 %1446 }
 0x106   :  { %1266 = vrot.lane.b32.xlu0 %v1254_v6, %s4592_s0  ;;  %347 = vrot.lane.b32.xlu1 %v332_v7, %s4595_s29  ;;  %v1458_v6 = vmul.f32 %v5075_v60, %v4932_v43  ;;  %v5091_v7 = vsel %vm922_vm13, %v4349_v29, %v5065_v54 }
 0x10a   :  { %1468 = vrot.lane.b32.xlu0 %v1456_v11, %s4591_s26  ;;  %914 = vrot.lane.b32.xlu1 %v901_v12, %s4593_s27  ;;  %v4358_v11 = vpop.permute.xlu1 %4357  ;;  %v1257_v12 = vmul.f32 %v5091_v7, %v4944_v47 }
 0x10b   :  { %v4359_v14 = vunpack.i.l.bf16 %v4358_v11  ;;  %v5122_v31 = vunpack.i.h.bf16 %v4358_v11 }
 0x10e   :  { %520 = vrot.lane.b32.xlu0 %v307_v15, %s4597_s14  ;;  %516 = vrot.lane.b32.xlu1 %v305_v16, %s4597_s14  ;;  %v4355_v15 = vunpack.i.h.bf16 %v4353_v37  ;;  %v5099_v16 = vsel %vm722_vm14, %v5006_v9, %v1443_v49 }
 0x10f   :  { %v1457_v18 = vmul.f32 %v5099_v16, %v4942_v46 }
 0x110   :  { %v5112_v24 = vsel %vm353_vm15, %v4355_v15, %v4359_v14 }
 0x111   :  { %5799 = vst [vmem:[#allocation5_spill] sm:$0xff] %v5112_v24  ;;  %v1656_v29 = vmul.f32 %v5112_v24, %v4932_v43  ;;  %v5805_v24 = vmov 0.0  }
 0x112   :  { %716 = vrot.lane.b32.xlu0 %v702_v20, %s4594_s28  ;;  %912 = vrot.lane.b32.xlu1 %v900_v22, %s4593_s27  ;;  %v1460_v20 = vmul.f32 0.0, %v5081_v0  ;;  %v5109_v22 = vsel %vm722_vm14, %v1445_v32, %v5081_v0  ;;  %v5126_v32 = vsel %vm353_vm15, %v5055_v40, %v4355_v15 }
 0x113   :  { %5800 = vst [vmem:[#allocation6_spill] sm:$0xff] %v5126_v32  ;;  %v1655_v37 = vmul.f32 %v5126_v32, %v4942_v46 }
 0x116   :  { %720 = vrot.lane.b32.xlu0 %v704_v25, %s4594_s28  ;;  %918 = vrot.lane.b32.xlu1 %v903_v27, %s4593_s27  ;;  %v5114_v25 = vpop.permute.xlu1 %336  ;;  %v1459_v27 = vmul.f32 %v5109_v22, %v4944_v47 }
 0x11a   :  { %916 = vrot.lane.b32.xlu0 %v902_v35, %s4593_s27  ;;  %1079 = vrot.lane.b32.xlu1 %v4901_v21, %s4599_s15  ;;  %v1843_v35 = vpop.permute.xlu1 %1842 }
 0x11e   :  { %920 = vrot.lane.b32.xlu0 %v904_v41, %s4593_s27  ;;  %1270 = vrot.lane.b32.xlu1 %v1256_v48, %s4592_s0  ;;  %v5134_v41 = vsel %vm353_vm15, %v4359_v14, %v5122_v31  ;;  %v1845_v48 = vpop.permute.xlu0 %1844  ;;  %v4603_v14 = vmov 0  }
 0x11f   :  { %v1657_v49 = vmul.f32 %v5134_v41, %v4944_v47  ;;  %4361 = vset.pattern.permute.xlu0 %v4603_v14  ;;  %4362 = vset.pattern.permute.xlu1 %v4603_v14 }
 0x122   :  { %1666 = vrot.lane.b32.xlu0 %v1654_v51, %s4590_s20  ;;  %1259 = vrot.lane.b32.xlu1 %v4901_v21, %s4600_s16  ;;  %v1658_v51 = vmul.f32 0.0, %v5122_v31 }
 0x126   :  { %1868 = vrot.lane.b32.xlu0 %v1856_v56, %s4589_s19  ;;  %1274 = vrot.lane.b32.xlu1 %v1258_v59, %s4592_s0  ;;  %v5143_v56 = vsel %vm522_vm0, %v5069_v55, %v1843_v35  ;;  %v5146_v59 = vsel %vm522_vm0, %v1843_v35, %v1845_v48 }
 0x127   :  { %5801 = vst [vmem:[#allocation7_spill] sm:$0xff] %v5143_v56  ;;  %5802 = vst [vmem:[#allocation8_spill] sm:$0xff] %v5146_v59  ;;  %v1858_v11 = vmul.f32 %v5146_v59, %v4932_v43 }
 0x12a   :  { %1268 = vrot.lane.b32.xlu0 %v1255_v2, %s4592_s0  ;;  %1472 = vrot.lane.b32.xlu1 %v1458_v6, %s4591_s26  ;;  %v5148_v2 = vpop.permute.xlu1 %1846  ;;  %v1857_v6 = vmul.f32 %v5143_v56, %v4942_v46 }
 0x12b   :  { %5803 = vst [vmem:[#allocation9_spill] sm:$0xff] %v5148_v2 }
 0x12e   :  { %1272 = vrot.lane.b32.xlu0 %v1257_v12, %s4592_s0  ;;  %1461 = vrot.lane.b32.xlu1 %v4901_v21, %s4601_s17  ;;  %v5158_v12 = vsel %vm522_vm0, %v1845_v48, %v5148_v2 }
 0x12f   :  { %5804 = vst [vmem:[#allocation10_spill] sm:$0xff] %v5158_v12  ;;  %v1859_v15 = vmul.f32 %v5158_v12, %v4944_v47 }
 0x132   :  { %1470 = vrot.lane.b32.xlu0 %v1457_v18, %s4591_s26  ;;  %1476 = vrot.lane.b32.xlu1 %v1460_v20, %s4591_s26  ;;  %v1860_v18 = vmul.f32 0.0, %v5148_v2  ;;  %v2034_v20 = vld [vmem:[%s5765_s3] sm:$0xff] }
 0x136   :  { %1474 = vrot.lane.b32.xlu0 %v1459_v27, %s4591_s26  ;;  %1670 = vrot.lane.b32.xlu1 %v1656_v29, %s4590_s20  ;;  %v5172_v27 = vpop.permute.xlu0 %705 }
 0x13a   :  { %1668 = vrot.lane.b32.xlu0 %v1655_v37, %s4590_s20  ;;  %1659 = vrot.lane.b32.xlu1 %v4901_v21, %s4602_s18  ;;  %v344_v29 = vpop.permute.xlu0 %343  ;;  %v713_v37 = vpop.permute.xlu1 %712 }
 0x13e   :  { %1672 = vrot.lane.b32.xlu0 %v1657_v49, %s4590_s20  ;;  %1674 = vrot.lane.b32.xlu1 %v1658_v51, %s4590_s20  ;;  %v513_v35 = vpop.permute.xlu0 %512 }
 0x142   :  { %1870 = vrot.lane.b32.xlu0 %v1857_v6, %s4589_s19  ;;  %1872 = vrot.lane.b32.xlu1 %v1858_v11, %s4589_s19 }
 0x146   :  { %1874 = vrot.lane.b32.xlu0 %v1859_v15, %s4589_s19  ;;  %1861 = vrot.lane.b32.xlu1 %v4901_v21, %s4604_s21 }
 0x14a   :  { %1876 = vrot.lane.b32.xlu1 %v1860_v18, %s4589_s19  ;;  %2037 = vperm.xlu0 %4361, %v2034_v20  }
 0x168   :  { %v350_v48 = vpop.permute.xlu1 %349  ;;  %v346_v49 = vpop.permute.xlu0 %345 }
 0x169   :  { %v354_v20 = vsel %vm353_vm15, %v344_v29, %v346_v49 }
 0x16c   :  { %v519_v51 = vpop.permute.xlu1 %518  ;;  %v515_v6 = vpop.permute.xlu0 %514 }
 0x170   :  { %v715_v11 = vpop.permute.xlu1 %714  ;;  %v352_v14 = vpop.permute.xlu0 %351 }
 0x171   :  { %v357_v55 = vsel %vm353_vm15, %v350_v48, %v352_v14 }
 0x174   :  { %v719_v15 = vpop.permute.xlu1 %718  ;;  %v5174_v1 = vpop.permute.xlu0 %905 }
 0x178   :  { %v5176_v12 = vpop.permute.xlu0 %1266  ;;  %v348_v2 = vpop.permute.xlu1 %347 }
 0x179   :  { %v355_v18 = vsel %vm353_vm15, %v346_v49, %v348_v2  ;;  %v356_v59 = vsel %vm353_vm15, %v348_v2, %v350_v48  ;;  %v523_v2 = vsel %vm522_vm0, %v513_v35, %v515_v6  ;;  %v723_v35 = vsel %vm722_vm14, %v713_v37, %v715_v11 }
 0x17a   :  { %365 = vmatprep.subr.mxu1 %v355_v18 }
 0x17b   :  { %366 = vmatpush1.msra.mxu1 %v354_v20 }
 0x17c   :  { %v5182_v56 = vpop.permute.xlu0 %1468  ;;  %4090 = vmatmul.mubr.msk.f32.vlgmr.msra.gmra.mrb[2].mxu1 %vm362_vm1, %v5114_v25  ;;  %436 = vmatprep.subr.mxu1 %v357_v55  ;;  %v915_v40 = vpop.permute.xlu1 %914 }
 0x17d   :  { %437 = vmatpush1.msra.mxu1 %v356_v59  ;;  %500 = vmatprep.mubr.f32.mxu1 %v5805_v24 }
 0x180   :  { %v521_v32 = vpop.permute.xlu0 %520  ;;  %4091 = vmatmul.mubr.msk.f32.vlgmr.msra.gmra.mrb[4].mxu1 %vm362_vm1, %v5114_v25  ;;  %v517_v29 = vpop.permute.xlu1 %516 }
 0x181   :  { %v524_v49 = vsel %vm522_vm0, %v515_v6, %v517_v29  ;;  %597 = vmatprep.mubr.f32.mxu1 %v5805_v24  ;;  %v526_v48 = vsel %vm522_vm0, %v519_v51, %v521_v32  ;;  %v525_v55 = vsel %vm522_vm0, %v517_v29, %v519_v51 }
 0x182   :  { %533 = vmatprep.subr.mxu1 %v524_v49 }
 0x183   :  { %534 = vmatpush1.msra.mxu1 %v523_v2 }
 0x184   :  { %v717_v59 = vpop.permute.xlu0 %716  ;;  %4092 = vmatmul.mubr.msk.f32.vlgmr.msra.gmra.mrb[2].mxu1 %vm362_vm1, %v4901_v21  ;;  %604 = vmatprep.subr.mxu1 %v526_v48  ;;  %v913_v14 = vpop.permute.xlu1 %912 }
 0x185   :  { %605 = vmatpush1.msra.mxu1 %v525_v55  ;;  %v724_v25 = vsel %vm722_vm14, %v715_v11, %v717_v59  ;;  %668 = vmatprep.mubr.f32.mxu1 %v5805_v24  ;;  %v725_v18 = vsel %vm722_vm14, %v717_v59, %v719_v15 }
 0x186   :  { %733 = vmatprep.subr.mxu1 %v724_v25 }
 0x188   :  { %v721_v6 = vpop.permute.xlu0 %720  ;;  %4093 = vmatmul.mubr.msk.f32.vlgmr.msra.gmra.mrb[4].mxu1 %vm362_vm1, %v4901_v21  ;;  %v919_v32 = vpop.permute.xlu1 %918  ;;  %v923_v21 = vsel %vm922_vm13, %v913_v14, %v915_v40 }
 0x189   :  { %734 = vmatpush1.msra.mxu1 %v723_v35  ;;  %v726_v51 = vsel %vm722_vm14, %v719_v15, %v721_v6  ;;  %797 = vmatprep.mubr.f32.mxu1 %v5805_v24 }
 0x18a   :  { %804 = vmatprep.subr.mxu1 %v726_v51 }
 0x18c   :  { %v917_v20 = vpop.permute.xlu0 %916  ;;  %4094 = vmatmul.mubr.msk.f32.vlgmr.msra.gmra.mrb[2].mxu1 %vm362_vm1, %v5172_v27  ;;  %v1080_v29 = vpop.permute.xlu1 %1079 }
 0x18d   :  { %805 = vmatpush1.msra.mxu1 %v725_v18  ;;  %v924_v37 = vsel %vm922_vm13, %v915_v40, %v917_v20  ;;  %868 = vmatprep.mubr.f32.mxu1 %v5805_v24  ;;  %v925_v2 = vsel %vm922_vm13, %v917_v20, %v919_v32 }
 0x18e   :  { %933 = vmatprep.subr.mxu1 %v924_v37 }
 0x190   :  { %v921_v11 = vpop.permute.xlu0 %920  ;;  %4095 = vmatmul.mubr.msk.f32.vlgmr.msra.gmra.mrb[4].mxu1 %vm362_vm1, %v5172_v27  ;;  %v1271_v49 = vpop.permute.xlu1 %1270 }
 0x191   :  { %934 = vmatpush1.msra.mxu1 %v923_v21  ;;  %v926_v15 = vsel %vm922_vm13, %v919_v32, %v921_v11  ;;  %997 = vmatprep.mubr.f32.mxu1 %v5805_v24 }
 0x192   :  { %1004 = vmatprep.subr.mxu1 %v926_v15 }
 0x194   :  { %v1667_v48 = vpop.permute.xlu0 %1666  ;;  %4096 = vmatmul.mubr.msk.f32.vlgmr.msra.gmra.mrb[2].mxu1 %vm362_vm1, %v5174_v1  ;;  %v1260_v55 = vpop.permute.xlu1 %1259 }
 0x195   :  { %1005 = vmatpush1.msra.mxu1 %v925_v2  ;;  %1068 = vmatprep.mubr.f32.mxu1 %v5805_v24 }
 0x196   :  { %1083 = vmatprep.subr.mxu1 %v4942_v46 }
 0x198   :  { %v1869_v40 = vpop.permute.xlu0 %1868  ;;  %4097 = vmatmul.mubr.msk.f32.vlgmr.msra.gmra.mrb[4].mxu1 %vm362_vm1, %v5174_v1  ;;  %v1275_v27 = vpop.permute.xlu1 %1274 }
 0x199   :  { %1084 = vmatpush1.msra.mxu1 %v4930_v42  ;;  %1147 = vmatprep.mubr.f32.mxu1 %v5805_v24 }
 0x19a   :  { %1154 = vmatprep.subr.mxu1 %v4944_v47 }
 0x19c   :  { %v1269_v59 = vpop.permute.xlu0 %1268  ;;  %4098 = vmatmul.mubr.msk.f32.vlgmr.msra.gmra.mrb[2].mxu1 %vm362_vm1, %v1080_v29  ;;  %v1473_v14 = vpop.permute.xlu1 %1472 }
 0x19d   :  { %1155 = vmatpush1.msra.mxu1 %v4932_v43  ;;  %v1277_v25 = vsel %vm891_vm12, %v1269_v59, %v1271_v49  ;;  %1218 = vmatprep.mubr.f32.mxu1 %v5805_v24  ;;  %v1276_v1 = vsel %vm891_vm12, %v5176_v12, %v1269_v59 }
 0x19e   :  { %1286 = vmatprep.subr.mxu1 %v1277_v25 }
 0x1a0   :  { %v1273_v46 = vpop.permute.xlu0 %1272  ;;  %4099 = vmatmul.mubr.msk.f32.vlgmr.msra.gmra.mrb[4].mxu1 %vm362_vm1, %v1080_v29  ;;  %v1462_v42 = vpop.permute.xlu1 %1461 }
 0x1a1   :  { %1287 = vmatpush1.msra.mxu1 %v1276_v1  ;;  %v1279_v47 = vsel %vm891_vm12, %v1273_v46, %v1275_v27  ;;  %1350 = vmatprep.mubr.f32.mxu1 %v5805_v24  ;;  %v1278_v43 = vsel %vm891_vm12, %v1271_v49, %v1273_v46  ;;  %v5255_v1 = vld [vmem:[#allocation2] sm:$0xff] }
 0x1a2   :  { %1357 = vmatprep.subr.mxu1 %v1279_v47 }
 0x1a4   :  { %v1471_v35 = vpop.permute.xlu0 %1470  ;;  %4100 = vmatmul.mubr.msk.f32.vlgmr.msra.gmra.mrb[2].mxu1 %vm362_vm1, %v1260_v55  ;;  %v1477_v6 = vpop.permute.xlu1 %1476 }
 0x1a5   :  { %1358 = vmatpush1.msra.mxu1 %v1278_v43  ;;  %v1479_v32 = vsel %vm691_vm11, %v1471_v35, %v1473_v14  ;;  %1421 = vmatprep.mubr.f32.mxu1 %v5805_v24  ;;  %v1478_v12 = vsel %vm691_vm11, %v5182_v56, %v1471_v35 }
 0x1a6   :  { %1488 = vmatprep.subr.mxu1 %v1479_v32 }
 0x1a8   :  { %v1475_v51 = vpop.permute.xlu0 %1474  ;;  %4101 = vmatmul.mubr.msk.f32.vlgmr.msra.gmra.mrb[4].mxu1 %vm362_vm1, %v1260_v55  ;;  %v1671_v18 = vpop.permute.xlu1 %1670 }
 0x1a9   :  { %1489 = vmatpush1.msra.mxu1 %v1478_v12  ;;  %v1481_v20 = vsel %vm691_vm11, %v1475_v51, %v1477_v6  ;;  %1552 = vmatprep.mubr.f32.mxu1 %v5805_v24  ;;  %v1480_v29 = vsel %vm691_vm11, %v1473_v14, %v1475_v51 }
 0x1aa   :  { %1559 = vmatprep.subr.mxu1 %v1481_v20 }
 0x1ac   :  { %v1669_v37 = vpop.permute.xlu0 %1668  ;;  %4102 = vmatmul.mubr.msk.f32.vlgmr.msra.gmra.mrb[2].mxu1 %vm362_vm1, %v1462_v42  ;;  %v1660_v21 = vpop.permute.xlu1 %1659 }
 0x1ad   :  { %1560 = vmatpush1.msra.mxu1 %v1480_v29  ;;  %v1677_v11 = vsel %vm321_vm9, %v1669_v37, %v1671_v18  ;;  %1623 = vmatprep.mubr.f32.mxu1 %v5805_v24  ;;  %v1676_v56 = vsel %vm321_vm9, %v1667_v48, %v1669_v37 }
 0x1ae   :  { %1686 = vmatprep.subr.mxu1 %v1677_v11 }
 0x1b0   :  { %v1673_v49 = vpop.permute.xlu0 %1672  ;;  %4103 = vmatmul.mubr.msk.f32.vlgmr.msra.gmra.mrb[4].mxu1 %vm362_vm1, %v1462_v42  ;;  %v1675_v15 = vpop.permute.xlu1 %1674 }
 0x1b1   :  { %1687 = vmatpush1.msra.mxu1 %v1676_v56  ;;  %v1679_v2 = vsel %vm321_vm9, %v1673_v49, %v1675_v15  ;;  %1750 = vmatprep.mubr.f32.mxu1 %v5805_v24  ;;  %v1678_v55 = vsel %vm321_vm9, %v1671_v18, %v1673_v49 }
 0x1b2   :  { %1757 = vmatprep.subr.mxu1 %v1679_v2 }
 0x1b4   :  { %v1871_v27 = vpop.permute.xlu0 %1870  ;;  %4104 = vmatmul.mubr.msk.f32.vlgmr.msra.gmra.mrb[2].mxu1 %vm362_vm1, %v1660_v21  ;;  %v1873_v59 = vpop.permute.xlu1 %1872 }
 0x1b5   :  { %1758 = vmatpush1.msra.mxu1 %v1678_v55  ;;  %v1879_v14 = vsel %vm294_vm10, %v1871_v27, %v1873_v59  ;;  %1821 = vmatprep.mubr.f32.mxu1 %v5805_v24  ;;  %v1878_v48 = vsel %vm294_vm10, %v1869_v40, %v1871_v27 }
 0x1b6   :  { %1888 = vmatprep.subr.mxu1 %v1879_v14 }
 0x1b8   :  { %4105 = vmatmul.mubr.msk.f32.vlgmr.msra.gmra.mrb[4].mxu1 %vm362_vm1, %v1660_v21  ;;  %v1862_v25 = vpop.permute.xlu1 %1861  ;;  %v1875_v46 = vpop.permute.xlu0 %1874 }
 0x1b9   :  { %1889 = vmatpush1.msra.mxu1 %v1878_v48  ;;  %1952 = vmatprep.mubr.f32.mxu1 %v5255_v1  ;;  %v1880_v24 = vsel %vm294_vm10, %v1873_v59, %v1875_v46 }
 0x1bc   :  { %4106 = vmatmul.mubr.msk.f32.vlgmr.msra.gmra.mrb[2].mxu1 %vm362_vm1, %v1862_v25  ;;  %v1877_v42 = vpop.permute.xlu1 %1876 }
 0x1bd   :  { %v1881_v47 = vsel %vm294_vm10, %v1875_v46, %v1877_v42  ;;  %2023 = vmatprep.mubr.f32.mxu1 %v5255_v1 }
 0x1be   :  { %1959 = vmatprep.subr.mxu1 %v1881_v47 }
 0x1bf   :  { %1960 = vmatpush1.msra.mxu1 %v1880_v24 }
 0x1c0   :  { %4107 = vmatmul.mubr.msk.f32.vlgmr.msra.gmra.mrb[4].mxu1 %vm362_vm1, %v1862_v25 }
 0x1c9   :  { %v2038_v40 = vpop.permute.xlu0 %2037 }
 0x28f   :  { %v1954_v43 = vpop.f32.mrb[2].mxu1 }
 0x290   :  { %v2040_v35 = vadd.f32 %v2038_v40, %v1954_v43  ;;  %v1956_v6 = vpop.f32.mrb[3].mxu1 }
 0x291   :  { %v2041_v32 = vadd.f32 %v2038_v40, %v1956_v6 }
 0x292   :  { %v2048_v12 = vmin.f32 %v2040_v35, 0.0  ;;  %vm2044_vm2 = vcmp.gt.f32.partialorder %v2040_v35, 0.0 }
 0x293   :  { %v2049_v51 = vmin.f32 %v2041_v32, 0.0  ;;  %v2025_v18 = vpop.f32.mrb[4].mxu1  ;;  %vm2045_vm3 = vcmp.gt.f32.partialorder %v2041_v32, 0.0 }
 0x294   :  { %v2052_v20 = vmul.f32 1.442695, %v2048_v12  ;;  %v2042_v29 = vadd.f32 %v2038_v40, %v2025_v18  ;;  %v2027_v37 = vpop.f32.mrb[5].mxu1 }
 0x295   :  { %v2054_v21 = vmul.f32 1.442695, %v2049_v51  ;;  %v2043_v11 = vadd.f32 %v2038_v40, %v2027_v37 }
 0x296   :  { %4565 = vpow2.f32 %v2052_v20  ;;  %v2050_v56 = vmin.f32 %v2042_v29, 0.0  ;;  %vm2046_vm4 = vcmp.gt.f32.partialorder %v2042_v29, 0.0 }
 0x297   :  { %4567 = vpow2.f32 %v2054_v21  ;;  %v2051_v49 = vmin.f32 %v2043_v11, 0.0  ;;  %vm2047_vm5 = vcmp.gt.f32.partialorder %v2043_v11, 0.0 }
 0x298   :  { %v2056_v15 = vmul.f32 1.442695, %v2050_v56 }
 0x299   :  { %v2058_v2 = vmul.f32 1.442695, %v2051_v49 }
 0x29a   :  { %4569 = vpow2.f32 %v2056_v15 }
 0x29b   :  { %4571 = vpow2.f32 %v2058_v2 }
 0x2a0   :  { %v4566_v55 = vpop.eup %4565 }
 0x2a1   :  { %v4568_v27 = vpop.eup %4567  ;;  %v4108_v59 = vadd.f32 -1.0, %v4566_v55 }
 0x2a2   :  { %v4109_v14 = vadd.f32 -1.0, %v4568_v27  ;;  %v2103_v27 = vld [vmem:[%s5766_s5] sm:$0xff] }
 0x2a3   :  { %v2064_v48 = vsel %vm2044_vm2, %v2040_v35, %v4108_v59  ;;  %v2160_v59 = vmul.f32 %v5255_v1, %v4914_v28 }
 0x2a4   :  { %v4570_v25 = vpop.eup %4569  ;;  %v2065_v46 = vsel %vm2045_vm3, %v2041_v32, %v4109_v14  ;;  %v5284_v14 = vld [vmem:[#allocation2 + $0x48] sm:$0xff] }
 0x2a5   :  { %v4572_v42 = vpop.eup %4571  ;;  %v4110_v47 = vadd.f32 -1.0, %v4570_v25  ;;  %v2068_v24 = vadd.f32 %v2065_v46, %v2064_v48  ;;  %v4368_v25 = vpack.i.bf16 %v2160_v59, %v2160_v59  ;;  %v2157_v28 = vmul.f32 %v5284_v14, %v4952_v50 }
 0x2a6   :  { %v4111_v40 = vadd.f32 -1.0, %v4572_v42 }
 0x2a7   :  { %v2066_v43 = vsel %vm2046_vm4, %v2042_v29, %v4110_v47 }
 0x2a8   :  { %v2067_v6 = vsel %vm2047_vm5, %v2043_v11, %v4111_v40  ;;  %v2069_v12 = vadd.f32 %v2068_v24, %v2066_v43  ;;  %v2149_v24 = vmul.f32 %v5255_v1, %v4917_v30 }
 0x2aa   :  { %v2070_v51 = vadd.f32 %v2069_v12, %v2067_v6  ;;  %v4383_v40 = vpack.i.bf16 %v2149_v24, %v2149_v24  ;;  %v5303_v12 = vld [vmem:[#allocation2 + $0x40] sm:$0xff]  ;;  %v2553_v24 = vmul.f32 %v5255_v1, %v4922_v33 }
 0x2ab   :  { %v2560_v30 = vmul.f32 %v5303_v12, %v5026_v19  ;;  %v2167_v53 = vmul.f32 %v5303_v12, %v4994_v5 }
 0x2ac   :  { %2071 = vadd.xlane.f32.xlu1 %v2070_v51 }
 0x339   :  { %v2072_v18 = vpop.xlane.xlu1 %2071 }
 0x33a   :  { %v2074_v20 = vmul.f32 0.001953125, %v2072_v18 }
 0x33c   :  { %v5263_v37 = vsub.f32 %v2064_v48, %v2074_v20  ;;  %v5265_v21 = vsub.f32 %v2065_v46, %v2074_v20  ;;  %v5267_v35 = vsub.f32 %v2066_v43, %v2074_v20  ;;  %v5269_v32 = vsub.f32 %v2067_v6, %v2074_v20  ;;  %v5286_v48 = vld [vmem:[#allocation2 + $0x50] sm:$0xff]  ;;  %v5301_v6 = vld [vmem:[#allocation2 + $0x38] sm:$0xff] }
 0x33d   :  { %v2168_v46 = vmul.f32 %v5284_v14, %v4936_v44  ;;  %v2169_v42 = vmul.f32 %v4926_v38, %v5286_v48  ;;  %v2158_v43 = vmul.f32 %v5286_v48, %v4928_v39  ;;  %v2559_v51 = vmul.f32 %v5301_v6, %v4968_v57 }
 0x33e   :  { %v2079_v56 = vmul.f32 %v5263_v37, %v5263_v37  ;;  %v2080_v29 = vmul.f32 %v5265_v21, %v5265_v21  ;;  %v2081_v11 = vmul.f32 %v5267_v35, %v5267_v35  ;;  %v2082_v15 = vmul.f32 %v5269_v32, %v5269_v32 }
 0x33f   :  { %v4373_v47 = vpack.i.bf16 %v2169_v42, %v2168_v46  ;;  %v4388_v18 = vpack.i.bf16 %v2158_v43, %v2157_v28  ;;  %v4393_v20 = vpack.i.bf16 %v2560_v30, %v2559_v51  ;;  %v2155_v10 = vmul.f32 %v5301_v6, %v4958_v52 }
 0x340   :  { %v2083_v49 = vadd.f32 %v2080_v29, %v2079_v56  ;;  %v5314_v56 = vld [vmem:[%s5767_s6] sm:$0xff]  ;;  %v2765_v29 = vmul.f32 %v5301_v6, %v5002_v8  ;;  %v2156_v42 = vmul.f32 %v5303_v12, %v5015_v13  ;;  %v2561_v28 = vmul.f32 %v5284_v14, %v4978_v61 }
 0x341   :  { %v2562_v43 = vmul.f32 %v5286_v48, %v4970_v58  ;;  %v2759_v30 = vmul.f32 %v5255_v1, %v4989_v4 }
 0x342   :  { %v2084_v2 = vadd.f32 %v2083_v49, %v2081_v11  ;;  %v2766_v11 = vmul.f32 %v5303_v12, %v5043_v34 }
 0x343   :  { %v4403_v51 = vpack.i.bf16 %v2562_v43, %v2561_v28 }
 0x344   :  { %v2085_v55 = vadd.f32 %v2084_v2, %v2082_v15  ;;  %v4408_v49 = vpack.i.bf16 %v2766_v11, %v2765_v29 }
 0x346   :  { %2086 = vadd.xlane.f32.xlu0 %v2085_v55 }
 0x35c   :  { %2106 = vperm.xlu0 %4361, %v2103_v27  }
 0x360   :  { %4369 = vrot.lane.b32.xlu0 %v4368_v25, %s4595_s29  ;;  %v2166_v25 = vmul.f32 %v5301_v6, %v4940_v45 }
 0x362   :  { %v4363_v46 = vpack.i.bf16 %v2167_v53, %v2166_v25 }
 0x364   :  { %4374 = vrot.lane.b32.xlu0 %v4373_v47, %s4595_s29  ;;  %v4378_v47 = vpack.i.bf16 %v2156_v42, %v2155_v10  ;;  %v3133_v10 = vmul.f32 %v5286_v48, %v5091_v7 }
 0x368   :  { %4384 = vrot.lane.b32.xlu0 %v4383_v40, %s4597_s14  ;;  %v4398_v40 = vpack.i.bf16 %v2553_v24, %v2553_v24  ;;  %v3339_v24 = vmul.f32 %v5286_v48, %v5109_v22 }
 0x36c   :  { %4389 = vrot.lane.b32.xlu0 %v4388_v18, %s4597_s14  ;;  %v4413_v18 = vpack.i.bf16 %v2759_v30, %v2759_v30 }
 0x370   :  { %4394 = vrot.lane.b32.xlu0 %v4393_v20, %s4594_s28 }
 0x374   :  { %2563 = vrot.lane.b32.xlu0 %v5314_v56, %s4599_s15 }
 0x378   :  { %4409 = vrot.lane.b32.xlu0 %v4408_v49, %s4593_s27 }
 0x3d3   :  { %v2087_v15 = vpop.xlane.xlu0 %2086 }
 0x3d4   :  { %v2088_v2 = vmul.f32 0.001953125, %v2087_v15 }
 0x3d6   :  { %v2089_v55 = vmax.f32 %v2088_v2, 0.0 }
 0x3d8   :  { %v2091_v27 = vadd.f32 1e-05, %v2089_v55 }
 0x3da   :  { %4573 = vrsqrt.f32 %v2091_v27 }
 0x3db   :  { %v2107_v15 = vpop.permute.xlu0 %2106 }
 0x3e4   :  { %v4574_v3 = vpop.eup %4573 }
 0x3e5   :  { %v2093_v59 = vmul.f32 %v4574_v3, %v2090_v26 }
 0x3e7   :  { %2096 = vperm.xlu1 %4362, %v2093_v59  }
 0x3eb   :  { %4364 = vrot.lane.b32.xlu1 %v4363_v46, %s4595_s29 }
 0x3ef   :  { %2171 = vrot.lane.b32.xlu1 %v5314_v56, %s4590_s20 }
 0x3f3   :  { %4379 = vrot.lane.b32.xlu1 %v4378_v47, %s4597_s14 }
 0x3f7   :  { %4399 = vrot.lane.b32.xlu1 %v4398_v40, %s4594_s28 }
 0x3fb   :  { %4404 = vrot.lane.b32.xlu1 %v4403_v51, %s4594_s28 }
 0x3ff   :  { %4414 = vrot.lane.b32.xlu1 %v4413_v18, %s4593_s27 }
 0x466   :  { %v2097_v33 = vpop.permute.xlu1 %2096 }
 0x467   :  { %v2099_v20 = vmul.f32 %v2097_v33, %v5263_v37  ;;  %v2100_v29 = vmul.f32 %v2097_v33, %v5265_v21  ;;  %v2101_v11 = vmul.f32 %v2097_v33, %v5267_v35  ;;  %v2102_v49 = vmul.f32 %v2097_v33, %v5269_v32 }
 0x469   :  { %v5369_v2 = vadd.f32 %v2107_v15, %v2099_v20  ;;  %v5371_v55 = vadd.f32 %v2107_v15, %v2100_v29  ;;  %v5373_v4 = vadd.f32 %v2107_v15, %v2101_v11  ;;  %v5375_v27 = vadd.f32 %v2107_v15, %v2102_v49 }
 0x46a   :  { %v3130_v20 = vmul.f32 %v4985_v63, %v5301_v6  ;;  %v3545_v11 = vmul.f32 %v5286_v48, %v5134_v41  ;;  %v3338_v49 = vmul.f32 %v5284_v14, %v5075_v60  ;;  %v3337_v15 = vmul.f32 %v5303_v12, %v5099_v16 }
 0x46b   :  { %2114 = vst [vmem:[%s5768_s11] sm:$0xff] %v5369_v2  ;;  %2115 = vst [vmem:[%s5768_s11 + $0x8] sm:$0xff] %v5371_v55  ;;  %v2161_v37 = vmul.f32 %v5369_v2, %v4940_v45  ;;  %v2162_v21 = vmul.f32 %v5371_v55, %v4994_v5  ;;  %v2150_v35 = vmul.f32 %v5369_v2, %v4958_v52 }
 0x46c   :  { %4113 = vst [vmem:[%s5768_s11 + $0x20] sm:$0xff] %v5373_v4  ;;  %4114 = vst [vmem:[%s5768_s11 + $0x28] sm:$0xff] %v5375_v27  ;;  %v2151_v32 = vmul.f32 %v5371_v55, %v5015_v13  ;;  %v2163_v3 = vmul.f32 %v5373_v4, %v4936_v44  ;;  %v2164_v59 = vmul.f32 %v4926_v38, %v5375_v27  ;;  %s4605_s11 = smov 48  }
 0x46d   :  { %v4418_v26 = vpack.i.bf16 %v2162_v21, %v2161_v37  ;;  %v2767_v5 = vmul.f32 %v5284_v14, %v5033_v23  ;;  %v2768_v52 = vmul.f32 %v5021_v17, %v5286_v48  ;;  %v2556_v13 = vmul.f32 %v5373_v4, %v4978_v61 }
 0x46e   :  { %v4433_v25 = vpack.i.bf16 %v2151_v32, %v2150_v35  ;;  %v4423_v45 = vpack.i.bf16 %v2164_v59, %v2163_v3  ;;  %v2557_v44 = vmul.f32 %v5375_v27, %v4970_v58  ;;  %v2152_v53 = vmul.f32 %v5373_v4, %v4952_v50  ;;  %v5806_v3 = vld [vmem:[#allocation6_spill] sm:$0xff] }
 0x46f   :  { %4419 = vrot.lane.b32.xlu1 %v4418_v26, %s4595_s29  ;;  %v4428_v38 = vpack.i.bf16 %v2768_v52, %v2767_v5  ;;  %v2153_v46 = vmul.f32 %v5375_v27, %v4928_v39  ;;  %v5426_v61 = vmul.f32 %v5255_v1, %v5065_v54  ;;  %v2554_v47 = vmul.f32 %v5369_v2, %v4968_v57 }
 0x470   :  { %4434 = vrot.lane.b32.xlu0 %v4433_v25, %s4597_s14  ;;  %v4448_v42 = vpack.i.bf16 %v2557_v44, %v2556_v13  ;;  %v2555_v50 = vmul.f32 %v5371_v55, %v5026_v19  ;;  %v5436_v39 = vmul.f32 %v5255_v1, %v5081_v0  ;;  %v2762_v57 = vmul.f32 %v5373_v4, %v5033_v23  ;;  %v5807_v25 = vld [vmem:[#allocation5_spill] sm:$0xff]  ;;  %v5808_v13 = vld [vmem:[#allocation3_spill] sm:$0xff] }
 0x471   :  { %v4438_v58 = vpack.i.bf16 %v2153_v46, %v2152_v53  ;;  %v4463_v54 = vpack.i.bf16 %v5426_v61, %v3133_v10  ;;  %v2763_v19 = vmul.f32 %v5021_v17, %v5375_v27  ;;  %v2760_v0 = vmul.f32 %v5369_v2, %v5002_v8 }
 0x472   :  { %v4443_v28 = vpack.i.bf16 %v2555_v50, %v2554_v47  ;;  %v4473_v40 = vpack.i.bf16 %v5436_v39, %v3339_v24  ;;  %v2761_v43 = vmul.f32 %v5371_v55, %v5043_v34  ;;  %v3126_v30 = vmul.f32 %v5371_v55, %v5079_v62 }
 0x473   :  { %4424 = vrot.lane.b32.xlu1 %v4423_v45, %s4595_s29  ;;  %v4478_v51 = vpack.i.bf16 %v2763_v19, %v2762_v57  ;;  %v3127_v23 = vmul.f32 %v5373_v4, %v5050_v36  ;;  %v3132_v17 = vmul.f32 %v5284_v14, %v5050_v36  ;;  %v3131_v8 = vmul.f32 %v5303_v12, %v5079_v62  ;;  %v5812_v57 = vld [vmem:[#allocation9_spill] sm:$0xff] }
 0x474   :  { %2769 = vrot.lane.b32.xlu0 %v5314_v56, %s4601_s17  ;;  %v4453_v18 = vpack.i.bf16 %v2761_v43, %v2760_v0  ;;  %v3125_v33 = vmul.f32 %v4985_v63, %v5369_v2  ;;  %v3546_v62 = vmul.f32 %v5255_v1, %v5122_v31  ;;  %v3332_v63 = vmul.f32 %v5371_v55, %v5099_v16  ;;  %v5813_v0 = vld [vmem:[#allocation10_spill] sm:$0xff] }
 0x475   :  { %v4483_v34 = vpack.i.bf16 %v3127_v23, %v3126_v30  ;;  %v4458_v29 = vpack.i.bf16 %v3132_v17, %v3131_v8  ;;  %v3333_v21 = vmul.f32 %v5373_v4, %v5075_v60  ;;  %v4468_v31 = vpack.i.bf16 %v3338_v49, %v3337_v15 }
 0x476   :  { %v4488_v36 = vpack.i.bf16 %v3130_v20, %v3125_v33  ;;  %v4503_v37 = vpack.i.bf16 %v3546_v62, %v3545_v11  ;;  %v3331_v32 = vmul.f32 %v5369_v2, %v5006_v9  ;;  %v3336_v26 = vmul.f32 %v5301_v6, %v5006_v9  ;;  %v4370_v33 = vpop.permute.xlu0 %4369  ;;  %v4365_v20 = vpop.permute.xlu1 %4364 }
 0x477   :  { %4429 = vrot.lane.b32.xlu1 %v4428_v38, %s4593_s27  ;;  %v4508_v35 = vpack.i.bf16 %v3333_v21, %v3332_v63  ;;  %v3128_v60 = vmul.f32 %v5375_v27, %v5091_v7  ;;  %v3538_v59 = vmul.f32 %v5371_v55, %v5806_v3  ;;  %v3539_v45 = vmul.f32 %v5373_v4, %v5807_v25 }
 0x478   :  { %4449 = vrot.lane.b32.xlu0 %v4448_v42, %s4594_s28  ;;  %v4513_v16 = vpack.i.bf16 %v3336_v26, %v3331_v32  ;;  %v3544_v9 = vmul.f32 %v5284_v14, %v5807_v25  ;;  %v3543_v5 = vmul.f32 %v5303_v12, %v5806_v3  ;;  %v3537_v44 = vmul.f32 %v5808_v13, %v5369_v2  ;;  %v5809_v42 = vld [vmem:[#allocation7_spill] sm:$0xff] }
 0x479   :  { %v4493_v7 = vpack.i.bf16 %v5426_v61, %v3128_v60  ;;  %v4523_v52 = vpack.i.bf16 %v3539_v45, %v3538_v59  ;;  %v3542_v38 = vmul.f32 %v5808_v13, %v5301_v6  ;;  %v3334_v46 = vmul.f32 %v5375_v27, %v5109_v22  ;;  %v5810_v61 = vld [vmem:[#allocation8_spill] sm:$0xff] }
 0x47a   :  { %v4498_v53 = vpack.i.bf16 %v3544_v9, %v3543_v5  ;;  %v3745_v47 = vmul.f32 %v5373_v4, %v5810_v61  ;;  %v3747_v19 = vmul.f32 %v5255_v1, %v5812_v57  ;;  %v3750_v30 = vmul.f32 %v5284_v14, %v5810_v61  ;;  %v5549_v11 = vpop.permute.xlu1 %2171 }
 0x47b   :  { %4439 = vrot.lane.b32.xlu1 %v4438_v58, %s4597_s14  ;;  %v4528_v10 = vpack.i.bf16 %v3542_v38, %v3537_v44  ;;  %v3744_v58 = vmul.f32 %v5371_v55, %v5809_v42  ;;  %v4518_v50 = vpack.i.bf16 %v5436_v39, %v3334_v46  ;;  %v3751_v39 = vmul.f32 %v5286_v48, %v5813_v0 }
 0x47c   :  { %4464 = vrot.lane.b32.xlu0 %v4463_v54, %s4592_s0  ;;  %v5811_v54 = vld [vmem:[#allocation4_spill] sm:$0xff]  ;;  %v3746_v8 = vmul.f32 %v5375_v27, %v5813_v0  ;;  %v4367_v32 = vunpack.i.h.bf16 %v4365_v20  ;;  %v4366_v26 = vunpack.i.l.bf16 %v4365_v20  ;;  %v4372_v60 = vunpack.i.h.bf16 %v4370_v33 }
 0x47d   :  { %v4543_v24 = vpack.i.bf16 %v3745_v47, %v3744_v58  ;;  %v3748_v22 = vmul.f32 %v5301_v6, %v5811_v54  ;;  %v4371_v3 = vunpack.i.l.bf16 %v4370_v33 }
 0x47f   :  { %4444 = vrot.lane.b32.xlu1 %v4443_v28, %s4594_s28  ;;  %v3743_v28 = vmul.f32 %v5369_v2, %v5811_v54 }
 0x480   :  { %4474 = vrot.lane.b32.xlu0 %v4473_v40, %s4591_s26  ;;  %v3540_v40 = vmul.f32 %v5375_v27, %v5134_v41  ;;  %v4558_v41 = vpack.i.bf16 %v3747_v19, %v3751_v39 }
 0x481   :  { %v4548_v43 = vpack.i.bf16 %v3748_v22, %v3743_v28 }
 0x482   :  { %v4533_v23 = vpack.i.bf16 %v3546_v62, %v3540_v40  ;;  %v5551_v62 = vpop.permute.xlu1 %4379 }
 0x483   :  { %2965 = vrot.lane.b32.xlu1 %v5314_v56, %s4604_s21  ;;  %v4382_v58 = vunpack.i.h.bf16 %v5551_v62  ;;  %v4381_v61 = vunpack.i.l.bf16 %v5551_v62 }
 0x484   :  { %4479 = vrot.lane.b32.xlu0 %v4478_v51, %s4593_s27  ;;  %v3749_v51 = vmul.f32 %v5303_v12, %v5809_v42 }
 0x486   :  { %v4538_v17 = vpack.i.bf16 %v3750_v30, %v3749_v51  ;;  %v5555_v15 = vpop.permute.xlu1 %4399 }
 0x487   :  { %4454 = vrot.lane.b32.xlu1 %v4453_v18, %s4593_s27  ;;  %s4606_s27 = smov 32   ;;  %v4553_v18 = vpack.i.bf16 %v3747_v19, %v3746_v8 }
 0x488   :  { %4484 = vrot.lane.b32.xlu0 %v4483_v34, %s4592_s0  ;;  %v3949_v34 = vld [vmem:[%s5770_s7] sm:$0xff] }
 0x48a   :  { %v5559_v63 = vpop.permute.xlu1 %4404 }
 0x48b   :  { %4459 = vrot.lane.b32.xlu1 %v4458_v29, %s4592_s0  ;;  %v4375_v29 = vpop.permute.xlu0 %4374 }
 0x48c   :  { %4489 = vrot.lane.b32.xlu0 %v4488_v36, %s4592_s0  ;;  %v4377_v9 = vunpack.i.h.bf16 %v4375_v29  ;;  %v4376_v5 = vunpack.i.l.bf16 %v4375_v29 }
 0x48e   :  { %v2210_v54 = vsel %vm353_vm15, %v4376_v5, %v4377_v9  ;;  %v2209_v28 = vsel %vm353_vm15, %v4367_v32, %v4376_v5  ;;  %v4401_v9 = vunpack.i.l.bf16 %v5555_v15 }
 0x48f   :  { %3135 = vrot.lane.b32.xlu1 %v5314_v56, %s4605_s11  ;;  %v4385_v36 = vpop.permute.xlu0 %4384 }
 0x490   :  { %4504 = vrot.lane.b32.xlu0 %v4503_v37, %s4590_s20  ;;  %v4386_v19 = vunpack.i.l.bf16 %v4385_v36 }
 0x493   :  { %4469 = vrot.lane.b32.xlu1 %v4468_v31, %s4591_s26  ;;  %v5553_v49 = vpop.permute.xlu0 %4389  ;;  %v5563_v31 = vpop.permute.xlu1 %4414 }
 0x494   :  { %4509 = vrot.lane.b32.xlu0 %v4508_v35, %s4591_s26  ;;  %v4392_v51 = vunpack.i.h.bf16 %v5553_v49  ;;  %v4391_v30 = vunpack.i.l.bf16 %v5553_v49 }
 0x497   :  { %3341 = vrot.lane.b32.xlu1 %v5314_v56, %s4606_s27  ;;  %v5557_v37 = vpop.permute.xlu0 %4394 }
 0x498   :  { %4514 = vrot.lane.b32.xlu0 %v4513_v16, %s4591_s26 }
 0x49b   :  { %4494 = vrot.lane.b32.xlu1 %v4493_v7, %s4592_s0  ;;  %v5561_v21 = vpop.permute.xlu0 %2563  ;;  %v2207_v7 = vsel %vm353_vm15, %v4372_v60, %v4366_v26  ;;  %v2399_v60 = vsel %vm522_vm0, %v4382_v58, %v4391_v30 }
 0x49c   :  { %4524 = vrot.lane.b32.xlu0 %v4523_v52, %s4590_s20  ;;  %v2208_v52 = vsel %vm353_vm15, %v4366_v26, %v4367_v32  ;;  %v4397_v32 = vunpack.i.h.bf16 %v5557_v37  ;;  %v4396_v26 = vunpack.i.l.bf16 %v5557_v37 }
 0x49f   :  { %4499 = vrot.lane.b32.xlu1 %v4498_v53, %s4590_s20  ;;  %v5565_v35 = vpop.permute.xlu0 %4409 }
 0x4a0   :  { %4529 = vrot.lane.b32.xlu0 %v4528_v10, %s4590_s20 }
 0x4a3   :  { %4519 = vrot.lane.b32.xlu1 %v4518_v50, %s4591_s26 }
 0x4a4   :  { %4544 = vrot.lane.b32.xlu0 %v4543_v24, %s4589_s19 }
 0x4a7   :  { %3547 = vrot.lane.b32.xlu1 %v5314_v56, %s4595_s29 }
 0x4a8   :  { %4549 = vrot.lane.b32.xlu0 %v4548_v43, %s4589_s19 }
 0x4ab   :  { %4534 = vrot.lane.b32.xlu1 %v4533_v23, %s4590_s20 }
 0x4ac   :  { %4559 = vrot.lane.b32.xlu0 %v4558_v41, %s4589_s19  ;;  %v2398_v41 = vsel %vm522_vm0, %v4381_v61, %v4382_v58 }
 0x4af   :  { %4539 = vrot.lane.b32.xlu1 %v4538_v17, %s4589_s19  ;;  %v4387_v17 = vunpack.i.h.bf16 %v4385_v36  ;;  %v2400_v36 = vsel %vm522_vm0, %v4391_v30, %v4392_v51  ;;  %v4416_v51 = vunpack.i.l.bf16 %v5563_v31 }
 0x4b3   :  { %4554 = vrot.lane.b32.xlu1 %v4553_v18, %s4589_s19 }
 0x4b7   :  { %3952 = vperm.xlu1 %4362, %v3949_v34   ;;  %v2397_v34 = vsel %vm522_vm0, %v4387_v17, %v4381_v61 }
 0x4e1   :  { %v4420_v16 = vpop.permute.xlu1 %4419 }
 0x4e2   :  { %v4422_v59 = vunpack.i.h.bf16 %v4420_v16  ;;  %v4421_v25 = vunpack.i.l.bf16 %v4420_v16  ;;  %v4435_v45 = vpop.permute.xlu0 %4434  ;;  %v4402_v16 = vunpack.i.h.bf16 %v5555_v15 }
 0x4e3   :  { %v4437_v44 = vunpack.i.h.bf16 %v4435_v45  ;;  %v4436_v38 = vunpack.i.l.bf16 %v4435_v45 }
 0x4e4   :  { %v2203_v13 = vsel %vm353_vm15, %v4371_v3, %v4421_v25  ;;  %v2204_v53 = vsel %vm353_vm15, %v4421_v25, %v4422_v59 }
 0x4e5   :  { %v4159_v46 = vpack.c.bf16 %v2207_v7, %v2203_v13  ;;  %v4425_v10 = vpop.permute.xlu1 %4424  ;;  %v4157_v42 = vpack.c.bf16 %v2208_v52, %v2204_v53  ;;  %v2394_v57 = vsel %vm522_vm0, %v4436_v38, %v4437_v44  ;;  %v2393_v8 = vsel %vm522_vm0, %v4386_v19, %v4436_v38 }
 0x4e6   :  { %v4427_v47 = vunpack.i.h.bf16 %v4425_v10  ;;  %v4426_v50 = vunpack.i.l.bf16 %v4425_v10  ;;  %v5573_v24 = vpop.permute.xlu0 %2769  ;;  %v4165_v18 = vpack.c.bf16 %v2398_v41, %v2394_v57  ;;  %v4167_v20 = vpack.c.bf16 %v2397_v34, %v2393_v8 }
 0x4e7   :  { %4158 = vmatprep.subr.bf16.mxu0 %v4157_v42  ;;  %v4407_v52 = vunpack.i.h.bf16 %v5559_v63  ;;  %v4406_v13 = vunpack.i.l.bf16 %v5559_v63 }
 0x4e8   :  { %v2205_v22 = vsel %vm353_vm15, %v4422_v59, %v4426_v50  ;;  %4160 = vmatpush1.bf16.msra.mxu0 %v4159_v46  ;;  %v2206_v40 = vsel %vm353_vm15, %v4426_v50, %v4427_v47  ;;  %v2600_v46 = vsel %vm722_vm14, %v4396_v26, %v4397_v32  ;;  %v4412_v47 = vunpack.i.h.bf16 %v5565_v35 }
 0x4e9   :  { %v4163_v0 = vpack.c.bf16 %v2209_v28, %v2205_v22  ;;  %v5580_v39 = vpop.permute.xlu1 %4429  ;;  %v4161_v43 = vpack.c.bf16 %v2210_v54, %v2206_v40  ;;  %v2602_v54 = vsel %vm722_vm14, %v4406_v13, %v4407_v52  ;;  %v4411_v28 = vunpack.i.l.bf16 %v5565_v35 }
 0x4ea   :  { %v4450_v23 = vpop.permute.xlu0 %4449  ;;  %v4417_v22 = vunpack.i.h.bf16 %v5563_v31  ;;  %v4432_v35 = vunpack.i.h.bf16 %v5580_v39 }
 0x4eb   :  { %4117 = vmatmul.mubr.msk.f32.vlgmr.msra.gmra.mrb[2].mxu0 %vm353_vm15, %v5549_v11  ;;  %4162 = vmatprep.subr.bf16.mxu0 %v4161_v43  ;;  %v4452_v3 = vunpack.i.h.bf16 %v4450_v23  ;;  %v4451_v59 = vunpack.i.l.bf16 %v4450_v23  ;;  %v2601_v43 = vsel %vm722_vm14, %v4397_v32, %v4406_v13  ;;  %v4431_v23 = vunpack.i.l.bf16 %v5580_v39 }
 0x4ec   :  { %4164 = vmatpush1.bf16.msra.mxu0 %v4163_v0  ;;  %2356 = vmatprep.mubr.f32.mxu0 %v5255_v1  ;;  %v2806_v34 = vsel %vm922_vm13, %v4411_v28, %v4412_v47 }
 0x4ed   :  { %v4440_v33 = vpop.permute.xlu1 %4439  ;;  %4166 = vmatprep.subr.bf16.mxu0 %v4165_v18  ;;  %v2598_v63 = vsel %vm722_vm14, %v4451_v59, %v4452_v3  ;;  %v2805_v18 = vsel %vm922_vm13, %v4417_v22, %v4411_v28  ;;  %v2808_v32 = vsel %vm922_vm13, %v4431_v23, %v4432_v35 }
 0x4ee   :  { %v4442_v29 = vunpack.i.h.bf16 %v4440_v33  ;;  %v4441_v62 = vunpack.i.l.bf16 %v4440_v33  ;;  %v5590_v49 = vpop.permute.xlu0 %4464  ;;  %v4177_v57 = vpack.c.bf16 %v2602_v54, %v2598_v63 }
 0x4ef   :  { %4118 = vmatmul.mubr.msk.f32.vlgmr.msra.gmra.mrb[4].mxu0 %vm353_vm15, %v5549_v11 }
 0x4f0   :  { %v2395_v25 = vsel %vm522_vm0, %v4437_v44, %v4441_v62  ;;  %4168 = vmatpush1.bf16.msra.mxu0 %v4167_v20  ;;  %2475 = vmatprep.mubr.f32.mxu0 %v5255_v1  ;;  %v2396_v45 = vsel %vm522_vm0, %v4441_v62, %v4442_v29  ;;  %v2599_v44 = vsel %vm722_vm14, %v4402_v16, %v4396_v26 }
 0x4f1   :  { %v4171_v5 = vpack.c.bf16 %v2399_v60, %v2395_v25  ;;  %v4445_v37 = vpop.permute.xlu1 %4444  ;;  %v4169_v7 = vpack.c.bf16 %v2400_v36, %v2396_v45  ;;  %v2807_v16 = vsel %vm922_vm13, %v4412_v47, %v4431_v23  ;;  %v4189_v45 = vpack.c.bf16 %v5303_v12, %v5371_v55 }
 0x4f2   :  { %v4447_v38 = vunpack.i.h.bf16 %v4445_v37  ;;  %v4446_v11 = vunpack.i.l.bf16 %v4445_v37  ;;  %v5605_v53 = vpop.permute.xlu0 %4474  ;;  %v4191_v37 = vpack.c.bf16 %v5301_v6, %v5369_v2  ;;  %v4193_v12 = vpack.c.bf16 %v5286_v48, %v5375_v27 }
 0x4f3   :  { %4119 = vmatmul.mubr.msk.f32.vlgmr.msra.gmra.mrb[2].mxu0 %vm353_vm15, %v5314_v56  ;;  %4170 = vmatprep.subr.bf16.mxu0 %v4169_v7  ;;  %v4195_v2 = vpack.c.bf16 %v5284_v14, %v5373_v4  ;;  %v4466_v27 = vunpack.i.l.bf16 %v5590_v49 }
 0x4f4   :  { %v2595_v15 = vsel %vm722_vm14, %v4401_v9, %v4446_v11  ;;  %4172 = vmatpush1.bf16.msra.mxu0 %v4171_v5  ;;  %2546 = vmatprep.mubr.f32.mxu0 %v5255_v1  ;;  %v2596_v10 = vsel %vm722_vm14, %v4446_v11, %v4447_v38  ;;  %v2597_v40 = vsel %vm722_vm14, %v4447_v38, %v4451_v59 }
 0x4f5   :  { %v4175_v42 = vpack.c.bf16 %v2599_v44, %v2595_v15  ;;  %v5615_v58 = vpop.permute.xlu1 %2965  ;;  %v4173_v61 = vpack.c.bf16 %v2600_v46, %v2596_v10  ;;  %v4179_v41 = vpack.c.bf16 %v2601_v43, %v2597_v40  ;;  %v4467_v44 = vunpack.i.h.bf16 %v5590_v49 }
 0x4f6   :  { %v4480_v50 = vpop.permute.xlu0 %4479 }
 0x4f7   :  { %4120 = vmatmul.mubr.msk.f32.vlgmr.msra.gmra.mrb[4].mxu0 %vm353_vm15, %v5314_v56  ;;  %4174 = vmatprep.subr.bf16.mxu0 %v4173_v61  ;;  %v4482_v19 = vunpack.i.h.bf16 %v4480_v50  ;;  %v4481_v0 = vunpack.i.l.bf16 %v4480_v50 }
 0x4f8   :  { %4176 = vmatpush1.bf16.msra.mxu0 %v4175_v42  ;;  %2677 = vmatprep.mubr.f32.mxu0 %v5255_v1 }
 0x4f9   :  { %v4455_v30 = vpop.permute.xlu1 %4454  ;;  %4178 = vmatprep.subr.bf16.mxu0 %v4177_v57  ;;  %v2804_v39 = vsel %vm922_vm13, %v4481_v0, %v4482_v19  ;;  %v3174_v57 = vsel %vm891_vm12, %v4466_v27, %v4467_v44 }
 0x4fa   :  { %v4457_v17 = vunpack.i.h.bf16 %v4455_v30  ;;  %v4456_v56 = vunpack.i.l.bf16 %v4455_v30  ;;  %v5629_v8 = vpop.permute.xlu0 %4484  ;;  %v4185_v60 = vpack.c.bf16 %v2808_v32, %v2804_v39 }
 0x4fb   :  { %4121 = vmatmul.mubr.msk.f32.vlgmr.msra.gmra.mrb[2].mxu0 %vm353_vm15, %v5561_v21  ;;  %v4487_v7 = vunpack.i.h.bf16 %v5629_v8  ;;  %v4486_v52 = vunpack.i.l.bf16 %v5629_v8  ;;  %v4476_v8 = vunpack.i.l.bf16 %v5605_v53 }
 0x4fc   :  { %v2801_v31 = vsel %vm922_vm13, %v4416_v51, %v4456_v56  ;;  %4180 = vmatpush1.bf16.msra.mxu0 %v4179_v41  ;;  %2748 = vmatprep.mubr.f32.mxu0 %v5255_v1  ;;  %v2802_v33 = vsel %vm922_vm13, %v4456_v56, %v4457_v17  ;;  %v2803_v26 = vsel %vm922_vm13, %v4457_v17, %v4481_v0  ;;  %v4477_v56 = vunpack.i.h.bf16 %v5605_v53 }
 0x4fd   :  { %v4183_v20 = vpack.c.bf16 %v2805_v18, %v2801_v31  ;;  %v4460_v29 = vpop.permute.xlu1 %4459  ;;  %v4181_v62 = vpack.c.bf16 %v2806_v34, %v2802_v33  ;;  %v4187_v59 = vpack.c.bf16 %v2807_v16, %v2803_v26  ;;  %v3168_v48 = vsel %vm891_vm12, %v4486_v52, %v4487_v7 }
 0x4fe   :  { %v4490_v36 = vpop.permute.xlu0 %4489  ;;  %v4461_v9 = vunpack.i.l.bf16 %v4460_v29  ;;  %v3380_v16 = vsel %vm691_vm11, %v4476_v8, %v4477_v56 }
 0x4ff   :  { %4122 = vmatmul.mubr.msk.f32.vlgmr.msra.gmra.mrb[4].mxu0 %vm353_vm15, %v5561_v21  ;;  %4182 = vmatprep.subr.bf16.mxu0 %v4181_v62  ;;  %v4462_v21 = vunpack.i.h.bf16 %v4460_v29  ;;  %v4492_v13 = vunpack.i.h.bf16 %v4490_v36  ;;  %v4491_v38 = vunpack.i.l.bf16 %v4490_v36 }
 0x500   :  { %4184 = vmatpush1.bf16.msra.mxu0 %v4183_v20  ;;  %2883 = vmatprep.mubr.f32.mxu0 %v5255_v1 }
 0x501   :  { %v5645_v3 = vpop.permute.xlu1 %3135  ;;  %4186 = vmatprep.subr.bf16.mxu0 %v4185_v60  ;;  %v3172_v55 = vsel %vm891_vm12, %v4461_v9, %v4462_v21  ;;  %v3171_v46 = vsel %vm891_vm12, %v4492_v13, %v4461_v9  ;;  %v3173_v40 = vsel %vm891_vm12, %v4462_v21, %v4466_v27 }
 0x502   :  { %v5647_v25 = vpop.permute.xlu0 %4504  ;;  %v4197_v42 = vpack.c.bf16 %v3172_v55, %v3168_v48 }
 0x503   :  { %4123 = vmatmul.mubr.msk.f32.vlgmr.msra.gmra.mrb[2].mxu0 %vm353_vm15, %v5573_v24 }
 0x504   :  { %4188 = vmatpush1.bf16.msra.mxu0 %v4187_v59  ;;  %2954 = vmatprep.mubr.f32.mxu0 %v5255_v1 }
 0x505   :  { %v5654_v5 = vpop.permute.xlu1 %4469  ;;  %4190 = vmatprep.subr.bf16.mxu0 %v4189_v45 }
 0x506   :  { %v5660_v11 = vpop.permute.xlu0 %4509  ;;  %v4472_v10 = vunpack.i.h.bf16 %v5654_v5  ;;  %v4471_v63 = vunpack.i.l.bf16 %v5654_v5 }
 0x507   :  { %4124 = vmatmul.mubr.msk.f32.vlgmr.msra.gmra.mrb[4].mxu0 %vm353_vm15, %v5573_v24  ;;  %v3167_v24 = vsel %vm891_vm12, %v4491_v38, %v4486_v52  ;;  %v4512_v14 = vunpack.i.h.bf16 %v5660_v11  ;;  %v4511_v4 = vunpack.i.l.bf16 %v5660_v11 }
 0x508   :  { %4192 = vmatpush1.bf16.msra.mxu0 %v4191_v37  ;;  %3033 = vmatprep.mubr.f32.mxu0 %v5255_v1  ;;  %v4199_v61 = vpack.c.bf16 %v3171_v46, %v3167_v24  ;;  %v3378_v19 = vsel %vm691_vm11, %v4471_v63, %v4472_v10  ;;  %v3379_v32 = vsel %vm691_vm11, %v4472_v10, %v4476_v8 }
 0x509   :  { %v5668_v6 = vpop.permute.xlu1 %3341  ;;  %4194 = vmatprep.subr.bf16.mxu0 %v4193_v12  ;;  %v3374_v51 = vsel %vm691_vm11, %v4511_v4, %v4512_v14  ;;  %v4586_v12 = vld [vmem:[#allocation2] sm:$0xff] }
 0x50a   :  { %v4515_v15 = vpop.permute.xlu0 %4514  ;;  %v4205_v18 = vpack.c.bf16 %v3378_v19, %v3374_v51 }
 0x50b   :  { %4125 = vmatmul.mubr.msk.f32.vlgmr.msra.gmra.mrb[2].mxu0 %vm353_vm15, %v5615_v58  ;;  %v4517_v50 = vunpack.i.h.bf16 %v4515_v15  ;;  %v4516_v49 = vunpack.i.l.bf16 %v4515_v15 }
 0x50c   :  { %4196 = vmatpush1.bf16.msra.mxu0 %v4195_v2  ;;  %3104 = vmatprep.mubr.f32.mxu0 %v5255_v1 }
 0x50d   :  { %v4495_v47 = vpop.permute.xlu1 %4494  ;;  %4198 = vmatprep.subr.bf16.mxu0 %v4197_v42  ;;  %v3377_v41 = vsel %vm691_vm11, %v4517_v50, %v4471_v63 }
 0x50e   :  { %v4497_v54 = vunpack.i.h.bf16 %v4495_v47  ;;  %v4496_v28 = vunpack.i.l.bf16 %v4495_v47  ;;  %v5684_v22 = vpop.permute.xlu0 %4524 }
 0x50f   :  { %4126 = vmatmul.mubr.msk.f32.vlgmr.msra.gmra.mrb[4].mxu0 %vm353_vm15, %v5615_v58  ;;  %v3373_v58 = vsel %vm691_vm11, %v4516_v49, %v4511_v4  ;;  %v4527_v20 = vunpack.i.h.bf16 %v5684_v22  ;;  %v4526_v29 = vunpack.i.l.bf16 %v5684_v22 }
 0x510   :  { %v3169_v0 = vsel %vm891_vm12, %v4487_v7, %v4496_v28  ;;  %4200 = vmatpush1.bf16.msra.mxu0 %v4199_v61  ;;  %3249 = vmatprep.mubr.f32.mxu0 %v5255_v1  ;;  %v3170_v43 = vsel %vm891_vm12, %v4496_v28, %v4497_v54  ;;  %v4207_v33 = vpack.c.bf16 %v3377_v41, %v3373_v58  ;;  %v4507_v7 = vunpack.i.h.bf16 %v5647_v25  ;;  %v3753_v58 = vld [vmem:[%s5767_s6 + $0x8] sm:$0xff] }
 0x511   :  { %v4203_v35 = vpack.c.bf16 %v3173_v40, %v3169_v0  ;;  %v4500_v30 = vpop.permute.xlu1 %4499  ;;  %v4201_v23 = vpack.c.bf16 %v3174_v57, %v3170_v43  ;;  %v3580_v13 = vsel %vm321_vm9, %v4526_v29, %v4527_v20 }
 0x512   :  { %v4530_v17 = vpop.permute.xlu0 %4529  ;;  %v4502_v34 = vunpack.i.h.bf16 %v4500_v30  ;;  %v4501_v31 = vunpack.i.l.bf16 %v4500_v30 }
 0x513   :  { %4127 = vmatmul.mubr.msk.f32.vlgmr.msra.gmra.mrb[2].mxu0 %vm353_vm15, %v5645_v3  ;;  %4202 = vmatprep.subr.bf16.mxu0 %v4201_v23  ;;  %v4532_v26 = vunpack.i.h.bf16 %v4530_v17  ;;  %v4531_v60 = vunpack.i.l.bf16 %v4530_v17 }
 0x514   :  { %4204 = vmatpush1.bf16.msra.mxu0 %v4203_v35  ;;  %3320 = vmatprep.mubr.f32.mxu0 %v5255_v1  ;;  %v3584_v21 = vsel %vm321_vm9, %v4501_v31, %v4502_v34 }
 0x515   :  { %v4520_v39 = vpop.permute.xlu1 %4519  ;;  %4206 = vmatprep.subr.bf16.mxu0 %v4205_v18  ;;  %v3583_v38 = vsel %vm321_vm9, %v4532_v26, %v4501_v31  ;;  %v3579_v11 = vsel %vm321_vm9, %v4531_v60, %v4526_v29 }
 0x516   :  { %v4522_v62 = vunpack.i.h.bf16 %v4520_v39  ;;  %v4521_v36 = vunpack.i.l.bf16 %v4520_v39  ;;  %v5704_v53 = vpop.permute.xlu0 %4544  ;;  %v4215_v2 = vpack.c.bf16 %v3583_v38, %v3579_v11 }
 0x517   :  { %4128 = vmatmul.mubr.msk.f32.vlgmr.msra.gmra.mrb[4].mxu0 %vm353_vm15, %v5645_v3  ;;  %v4506_v3 = vunpack.i.l.bf16 %v5647_v25  ;;  %v4547_v24 = vunpack.i.h.bf16 %v5704_v53  ;;  %v4546_v25 = vunpack.i.l.bf16 %v5704_v53 }
 0x518   :  { %v3375_v59 = vsel %vm691_vm11, %v4512_v14, %v4521_v36  ;;  %4208 = vmatpush1.bf16.msra.mxu0 %v4207_v33  ;;  %3455 = vmatprep.mubr.f32.mxu0 %v5255_v1  ;;  %v3376_v45 = vsel %vm691_vm11, %v4521_v36, %v4522_v62  ;;  %v4213_v1 = vpack.c.bf16 %v3584_v21, %v3580_v13 }
 0x519   :  { %v4211_v9 = vpack.c.bf16 %v3379_v32, %v3375_v59  ;;  %v3548_v5 = vpop.permute.xlu1 %3547  ;;  %v4209_v37 = vpack.c.bf16 %v3380_v16, %v3376_v45  ;;  %v3586_v15 = vsel %vm321_vm9, %v4506_v3, %v4507_v7  ;;  %v3585_v48 = vsel %vm321_vm9, %v4502_v34, %v4506_v3 }
 0x51a   :  { %v4550_v52 = vpop.permute.xlu0 %4549  ;;  %v3785_v28 = vsel %vm294_vm10, %v4546_v25, %v4547_v24 }
 0x51b   :  { %4129 = vmatmul.mubr.msk.f32.vlgmr.msra.gmra.mrb[2].mxu0 %vm353_vm15, %v5668_v6  ;;  %4210 = vmatprep.subr.bf16.mxu0 %v4209_v37  ;;  %v4551_v27 = vunpack.i.l.bf16 %v4550_v52  ;;  %v4552_v47 = vunpack.i.h.bf16 %v4550_v52 }
 0x51c   :  { %4212 = vmatpush1.bf16.msra.mxu0 %v4211_v9  ;;  %3526 = vmatprep.mubr.f32.mxu0 %v4586_v12 }
 0x51d   :  { %v4535_v55 = vpop.permute.xlu1 %4534  ;;  %4214 = vmatprep.subr.bf16.mxu0 %v4213_v1  ;;  %v3784_v22 = vsel %vm294_vm10, %v4551_v27, %v4546_v25 }
 0x51e   :  { %v4537_v44 = vunpack.i.h.bf16 %v4535_v55  ;;  %v4536_v46 = vunpack.i.l.bf16 %v4535_v55  ;;  %v4560_v63 = vpop.permute.xlu0 %4559 }
 0x51f   :  { %4130 = vmatmul.mubr.msk.f32.vlgmr.msra.gmra.mrb[4].mxu0 %vm353_vm15, %v5668_v6  ;;  %v4562_v54 = vunpack.i.h.bf16 %v4560_v63  ;;  %v4561_v6 = vunpack.i.l.bf16 %v4560_v63 }
 0x520   :  { %v3581_v10 = vsel %vm321_vm9, %v4527_v20, %v4536_v46  ;;  %4216 = vmatpush1.bf16.msra.mxu0 %v4215_v2  ;;  %3661 = vmatprep.mubr.f32.mxu0 %v4586_v12  ;;  %v3582_v42 = vsel %vm321_vm9, %v4536_v46, %v4537_v44 }
 0x521   :  { %v4219_v14 = vpack.c.bf16 %v3585_v48, %v3581_v10  ;;  %v4540_v4 = vpop.permute.xlu1 %4539  ;;  %v4217_v61 = vpack.c.bf16 %v3586_v15, %v3582_v42  ;;  %v3791_v30 = vsel %vm294_vm10, %v4561_v6, %v4562_v54 }
 0x522   :  { %v4542_v50 = vunpack.i.h.bf16 %v4540_v4  ;;  %v4541_v49 = vunpack.i.l.bf16 %v4540_v4 }
 0x523   :  { %4131 = vmatmul.mubr.msk.f32.vlgmr.msra.gmra.mrb[2].mxu0 %vm353_vm15, %v3548_v5  ;;  %4218 = vmatprep.subr.bf16.mxu0 %v4217_v61 }
 0x524   :  { %v3788_v40 = vsel %vm294_vm10, %v4552_v47, %v4541_v49  ;;  %4220 = vmatpush1.bf16.msra.mxu0 %v4219_v14  ;;  %3732 = vmatprep.mubr.f32.mxu0 %v4586_v12  ;;  %v3789_v57 = vsel %vm294_vm10, %v4541_v49, %v4542_v50  ;;  %v3790_v23 = vsel %vm294_vm10, %v4542_v50, %v4561_v6  ;;  %v4017_v49 = vld [vmem:[%s5771_s9] sm:$0xff] }
 0x525   :  { %v4223_v19 = vpack.c.bf16 %v3788_v40, %v3784_v22  ;;  %v4555_v0 = vpop.permute.xlu1 %4554  ;;  %v4221_v43 = vpack.c.bf16 %v3789_v57, %v3785_v28  ;;  %v4004_v40 = vld [vmem:[%s5772_s8] sm:$0xff] }
 0x526   :  { %v4557_v51 = vunpack.i.h.bf16 %v4555_v0  ;;  %v4556_v35 = vunpack.i.l.bf16 %v4555_v0 }
 0x527   :  { %4132 = vmatmul.mubr.msk.f32.vlgmr.msra.gmra.mrb[4].mxu0 %vm353_vm15, %v3548_v5  ;;  %4222 = vmatprep.subr.bf16.mxu0 %v4221_v43 }
 0x528   :  { %v3786_v41 = vsel %vm294_vm10, %v4547_v24, %v4556_v35  ;;  %4224 = vmatpush1.bf16.msra.mxu0 %v4223_v19  ;;  %3867 = vmatprep.mubr.f32.mxu0 %v4586_v12  ;;  %v3787_v17 = vsel %vm294_vm10, %v4556_v35, %v4557_v51 }
 0x529   :  { %v4227_v56 = vpack.c.bf16 %v3790_v23, %v3786_v41  ;;  %v4225_v8 = vpack.c.bf16 %v3791_v30, %v3787_v17 }
 0x52b   :  { %4133 = vmatmul.mubr.msk.f32.vlgmr.msra.gmra.mrb[2].mxu0 %vm353_vm15, %v3753_v58  ;;  %4226 = vmatprep.subr.bf16.mxu0 %v4225_v8 }
 0x52c   :  { %4228 = vmatpush1.bf16.msra.mxu0 %v4227_v56  ;;  %3938 = vmatprep.mubr.f32.mxu0 %v4586_v12 }
 0x52f   :  { %4134 = vmatmul.mubr.msk.f32.vlgmr.msra.gmra.mrb[4].mxu0 %vm353_vm15, %v3753_v58 }
 0x536   :  { %v3953_v18 = vpop.permute.xlu1 %3952 }
 0x5fe   :  { %v3869_v34 = vpop.f32.mrb[2].mxu0 }
 0x5ff   :  { %v3955_v31 = vadd.f32 %v3953_v18, %v3869_v34  ;;  %v3871_v33 = vpop.f32.mrb[3].mxu0 }
 0x600   :  { %v3956_v39 = vadd.f32 %v3953_v18, %v3871_v33 }
 0x601   :  { %v3963_v20 = vmin.f32 %v3955_v31, 0.0  ;;  %vm3959_vm6 = vcmp.gt.f32.partialorder %v3955_v31, 0.0 }
 0x602   :  { %v3964_v29 = vmin.f32 %v3956_v39, 0.0  ;;  %v3940_v62 = vpop.f32.mrb[4].mxu0  ;;  %vm3960_vm7 = vcmp.gt.f32.partialorder %v3956_v39, 0.0 }
 0x603   :  { %v3967_v36 = vmul.f32 1.442695, %v3963_v20  ;;  %v3957_v53 = vadd.f32 %v3953_v18, %v3940_v62  ;;  %v3942_v32 = vpop.f32.mrb[5].mxu0 }
 0x604   :  { %v3969_v26 = vmul.f32 1.442695, %v3964_v29  ;;  %v3958_v60 = vadd.f32 %v3953_v18, %v3942_v32 }
 0x605   :  { %4575 = vpow2.f32 %v3967_v36  ;;  %v3965_v16 = vmin.f32 %v3957_v53, 0.0  ;;  %vm3961_vm8 = vcmp.gt.f32.partialorder %v3957_v53, 0.0 }
 0x606   :  { %4577 = vpow2.f32 %v3969_v26  ;;  %v3966_v59 = vmin.f32 %v3958_v60, 0.0  ;;  %vm3962_vm9 = vcmp.gt.f32.partialorder %v3958_v60, 0.0 }
 0x607   :  { %v3971_v45 = vmul.f32 1.442695, %v3965_v16 }
 0x608   :  { %v3973_v21 = vmul.f32 1.442695, %v3966_v59 }
 0x609   :  { %4579 = vpow2.f32 %v3971_v45 }
 0x60a   :  { %4581 = vpow2.f32 %v3973_v21 }
 0x60f   :  { %v4576_v9 = vpop.eup %4575 }
 0x610   :  { %v4578_v5 = vpop.eup %4577  ;;  %v4135_v37 = vadd.f32 -1.0, %v4576_v9 }
 0x611   :  { %v4136_v7 = vadd.f32 -1.0, %v4578_v5 }
 0x612   :  { %v3979_v52 = vsel %vm3959_vm6, %v3955_v31, %v4135_v37 }
 0x613   :  { %v4580_v13 = vpop.eup %4579  ;;  %v3980_v3 = vsel %vm3960_vm7, %v3956_v39, %v4136_v7 }
 0x614   :  { %v4582_v38 = vpop.eup %4581  ;;  %v3983_v11 = vadd.f32 %v3980_v3, %v3979_v52  ;;  %v4137_v1 = vadd.f32 -1.0, %v4580_v13 }
 0x615   :  { %v4138_v12 = vadd.f32 -1.0, %v4582_v38 }
 0x616   :  { %v3981_v55 = vsel %vm3961_vm8, %v3957_v53, %v4137_v1 }
 0x617   :  { %v3982_v2 = vsel %vm3962_vm9, %v3958_v60, %v4138_v12  ;;  %v3984_v44 = vadd.f32 %v3983_v11, %v3981_v55 }
 0x619   :  { %v3985_v46 = vadd.f32 %v3984_v44, %v3982_v2 }
 0x61b   :  { %3986 = vadd.xlane.f32.xlu0 %v3985_v46 }
 0x6a8   :  { %v3987_v24 = vpop.xlane.xlu0 %3986 }
 0x6a9   :  { %v3988_v25 = vmul.f32 0.001953125, %v3987_v24 }
 0x6ab   :  { %v3989_v15 = vsub.f32 %v3979_v52, %v3988_v25  ;;  %v3990_v48 = vsub.f32 %v3980_v3, %v3988_v25  ;;  %v3991_v27 = vsub.f32 %v3981_v55, %v3988_v25  ;;  %v3992_v10 = vsub.f32 %v3982_v2, %v3988_v25 }
 0x6ad   :  { %v3993_v63 = vmul.f32 %v3989_v15, %v3989_v15  ;;  %v3994_v42 = vmul.f32 %v3990_v48, %v3990_v48  ;;  %v3995_v14 = vmul.f32 %v3991_v27, %v3991_v27  ;;  %v3996_v61 = vmul.f32 %v3992_v10, %v3992_v10 }
 0x6af   :  { %v3997_v4 = vadd.f32 %v3994_v42, %v3993_v63 }
 0x6b1   :  { %v3998_v47 = vadd.f32 %v3997_v4, %v3995_v14 }
 0x6b3   :  { %v3999_v50 = vadd.f32 %v3998_v47, %v3996_v61 }
 0x6b5   :  { %4000 = vadd.xlane.f32.xlu1 %v3999_v50 }
 0x6c6   :  { %4020 = vperm.xlu1 %4362, %v4017_v49  }
 0x742   :  { %v4001_v54 = vpop.xlane.xlu1 %4000 }
 0x743   :  { %v4002_v6 = vmul.f32 0.001953125, %v4001_v54 }
 0x745   :  { %v4003_v28 = vmax.f32 %v4002_v6, 0.0 }
 0x746   :  { %v4021_v23 = vpop.permute.xlu1 %4020 }
 0x747   :  { %v4005_v22 = vadd.f32 0.005, %v4003_v28 }
 0x749   :  { %4583 = vrsqrt.f32 %v4005_v22 }
 0x753   :  { %v4584_v57 = vpop.eup %4583 }
 0x754   :  { %v4007_v19 = vmul.f32 %v4584_v57, %v4004_v40 }
 0x756   :  { %4010 = vperm.xlu0 %4361, %v4007_v19  }
 0x7d5   :  { %v4011_v0 = vpop.permute.xlu0 %4010 }
 0x7d6   :  { %v4013_v43 = vmul.f32 %v4011_v0, %v3989_v15  ;;  %v4014_v51 = vmul.f32 %v4011_v0, %v3990_v48  ;;  %v4015_v35 = vmul.f32 %v4011_v0, %v3991_v27  ;;  %v4016_v30 = vmul.f32 %v4011_v0, %v3992_v10 }
 0x7d8   :  { %v4023_v41 = vadd.f32 %v4021_v23, %v4013_v43  ;;  %v4024_v58 = vadd.f32 %v4021_v23, %v4014_v51  ;;  %v4025_v17 = vadd.f32 %v4021_v23, %v4015_v35  ;;  %v4026_v56 = vadd.f32 %v4021_v23, %v4016_v30 }
 0x7da   :  { %4027 = vst [vmem:[%s5773_s10] sm:$0xff] %v4023_v41  ;;  %4028 = vst [vmem:[%s5773_s10 + $0x8] sm:$0xff] %v4024_v58 }
 0x7db   :  { %4139 = vst [vmem:[%s5773_s10 + $0x10] sm:$0xff] %v4025_v17  ;;  %4140 = vst [vmem:[%s5773_s10 + $0x18] sm:$0xff] %v4026_v56 }

</bundles_post_ra>
